<compile_context>
chip_gen: v6e
topology: v6e:2x2x1
jax: 0.10.0
libtpu: 0.0.40
codegen_flags: <defaults>
</compile_context>

<pallas_src>
import functools
import math

import jax
import jax.numpy as jnp
from jax.experimental import pallas as pl
from jax.experimental.pallas import tpu as pltpu

_LANE = 128


def _round_up(x, m):
    return (x + m - 1) // m * m


def _apply_activation(h, act):
    if act is None:
        return h
    if act == "relu":
        return jnp.maximum(h, 0.0)
    if act == "tanh":
        return jnp.tanh(h)
    if act == "sigmoid":
        return jax.nn.sigmoid(h)
    raise ValueError(f"unsupported activation: {act}")


def _mlp_fused_kernel(*refs, activations, compute_dtype):
    # refs = (x_ref, w0_ref, b0_ref, w1_ref, b1_ref, ..., o_ref)
    # x_ref: (TB, In_pad); w_i: (Ki_pad, Ni_pad); b_i: (1, Ni_pad);
    # o_ref: (TB, Out_pad). All intermediates stay on-chip.
    x_ref, o_ref = refs[0], refs[-1]
    wb_refs = refs[1:-1]
    h = x_ref[...].astype(jnp.float32)
    for idx, act in enumerate(activations):
        w = wb_refs[2 * idx][...]
        b = wb_refs[2 * idx + 1][...]
        acc = jnp.dot(
            h.astype(compute_dtype),
            w.astype(compute_dtype),
            preferred_element_type=jnp.float32,
        )
        h = _apply_activation(acc + b.astype(jnp.float32), act)
    o_ref[...] = h.astype(o_ref.dtype)


def mlp_forward(x, params, *, tb: int = 128, compute_dtype=jnp.float32):
    """Fused MLP forward: y = act_L(...act_1(x @ W1 + b1)...) @ W_last + b_last.

    `params` is a list of (W (in,out) f32, b (1,out) f32, activation_name).
    The last entry is the final Linear (activation_name=None).
    """
    B, in_f = x.shape

    # ---- pad batch and feature dims to MXU/lane-friendly sizes -------------
    b_pad = _round_up(max(B, 1), tb)
    in_pad = _round_up(in_f, _LANE)
    x_p = jnp.zeros((b_pad, in_pad), x.dtype).at[:B, :in_f].set(x)

    padded, acts = [], []
    prev_pad = in_pad
    out_f = in_f
    weight_bytes = 0
    for w, b, act in params:
        fi, fo = w.shape
        assert _round_up(fi, _LANE) == prev_pad, "layer sizes must chain"
        fo_pad = _round_up(fo, _LANE)
        w_p = jnp.zeros((prev_pad, fo_pad), jnp.float32).at[:fi, :fo].set(w)
        b_p = jnp.zeros((1, fo_pad), jnp.float32).at[:, :fo].set(
            jnp.reshape(b, (1, fo)))
        padded.append((w_p, b_p))
        acts.append(act)
        weight_bytes += (w_p.size + b_p.size) * 4
        prev_pad = fo_pad
        out_f = fo
    out_pad = prev_pad

    # Rough VMEM sanity check for the fully-fused (whole-weights-resident) path.
    vmem_est = 2 * weight_bytes + 2 * 4 * tb * (in_pad + out_pad)
    assert vmem_est < 24 * 1024 * 1024, (
        "MLP too wide for the fully fused kernel; needs a K/N-tiled path")

    # ---- BlockSpecs ---------------------------------------------------------
    in_specs = [pl.BlockSpec((tb, in_pad), lambda i: (i, 0))]
    flat_inputs = [x_p]
    for w_p, b_p in padded:
        in_specs.append(pl.BlockSpec(w_p.shape, lambda i: (0, 0)))
        in_specs.append(pl.BlockSpec(b_p.shape, lambda i: (0, 0)))
        flat_inputs.append(w_p)
        flat_inputs.append(b_p)

    kernel = functools.partial(
        _mlp_fused_kernel,
        activations=tuple(acts),
        compute_dtype=compute_dtype,
    )

    out_padded = pl.pallas_call(
        kernel,
        out_shape=jax.ShapeDtypeStruct((b_pad, out_pad), x.dtype),
        grid_spec=pltpu.PrefetchScalarGridSpec(
            num_scalar_prefetch=0,
            grid=(b_pad // tb,),
            in_specs=in_specs,
            out_specs=pl.BlockSpec((tb, out_pad), lambda i: (i, 0)),
        ),
        compiler_params=pltpu.CompilerParams(
            dimension_semantics=("parallel",),
        ),
    )(*flat_inputs)

    return out_padded[:B, :out_f]


def init_mlp_params(key, input_size, layers_data, num_classes):
    """Deterministic init mimicking nn.Linear's default U(-1/sqrt(in), 1/sqrt(in)).

    layers_data: list of (output_size, activation_name) with activation in
    {"relu", "tanh", "sigmoid", None}. Returns list of
    (W (in,out), b (1,out), activation_name), including the final Linear to
    num_classes with no activation — matching MLP.forward's layer stack.
    """
    params = []
    in_f = input_size
    sizes = [(out_f, act) for out_f, act in layers_data] + [(num_classes, None)]
    for out_f, act in sizes:
        key, kw, kb = jax.random.split(key, 3)
        bound = 1.0 / math.sqrt(in_f)
        w = jax.random.uniform(kw, (in_f, out_f), jnp.float32, -bound, bound)
        b = jax.random.uniform(kb, (1, out_f), jnp.float32, -bound, bound)
        params.append((w, b, act))
        in_f = out_f
    return params


if __name__ == "__main__":
    # Shapes consistent with the module: input_size = 28*28 = 784, two hidden
    # ReLU layers, 10 output classes. Batch 256 -> grid of 2 batch tiles.
    input_size = 28 * 28
    num_classes = 10
    layers_data = [(64, "relu"), (32, "relu")]
    batch = 256

    key = jax.random.PRNGKey(0)
    key, kx = jax.random.split(key)
    x = jax.random.normal(kx, (batch, input_size), jnp.float32)

    params = init_mlp_params(key, input_size, layers_data, num_classes)

    logits = mlp_forward(x, params)
    jax.block_until_ready(logits)

    # Sanity check against a plain-JAX reference of the same forward pass.
    ref = x
    for w, b, act in params:
        ref = ref @ w + b
        if act == "relu":
            ref = jnp.maximum(ref, 0.0)
    assert logits.shape == (batch, num_classes)
    assert jnp.allclose(logits, ref, atol=1e-4, rtol=1e-4)

    print("KERNEL_OK")
</pallas_src>

<mosaic_0001>
module attributes {stable_mosaic.version = 11 : i64} {
  func.func @_mlp_fused_kernel(%arg0: i32, %arg1: memref<128x896xf32, #tpu.memory_space<vmem>>, %arg2: memref<896x128xf32, #tpu.memory_space<vmem>>, %arg3: memref<1x128xf32, #tpu.memory_space<vmem>>, %arg4: memref<128x128xf32, #tpu.memory_space<vmem>>, %arg5: memref<1x128xf32, #tpu.memory_space<vmem>>, %arg6: memref<128x128xf32, #tpu.memory_space<vmem>>, %arg7: memref<1x128xf32, #tpu.memory_space<vmem>>, %arg8: memref<128x128xf32, #tpu.memory_space<vmem>>) attributes {dimension_semantics = [#tpu.dimension_semantics<parallel>], iteration_bounds = array<i64: 2>, scalar_prefetch = 0 : i64, scratch_operands = 0 : i64, tpu.core_type = #tpu.core_type<tc>, window_params = [{transform_indices = @transform_0, window_bounds = array<i64: 128, 896>}, {pipeline_mode = #tpu.pipeline_mode<synchronous>, transform_indices = @transform_1, window_bounds = array<i64: 896, 128>}, {pipeline_mode = #tpu.pipeline_mode<synchronous>, transform_indices = @transform_2, window_bounds = array<i64: 1, 128>}, {pipeline_mode = #tpu.pipeline_mode<synchronous>, transform_indices = @transform_3, window_bounds = array<i64: 128, 128>}, {pipeline_mode = #tpu.pipeline_mode<synchronous>, transform_indices = @transform_4, window_bounds = array<i64: 1, 128>}, {pipeline_mode = #tpu.pipeline_mode<synchronous>, transform_indices = @transform_5, window_bounds = array<i64: 128, 128>}, {pipeline_mode = #tpu.pipeline_mode<synchronous>, transform_indices = @transform_6, window_bounds = array<i64: 1, 128>}, {transform_indices = @transform_7, window_bounds = array<i64: 128, 128>}]} {
    %c0 = arith.constant 0 : index
    %c0_0 = arith.constant 0 : index
    %0 = vector.load %arg1[%c0, %c0_0] : memref<128x896xf32, #tpu.memory_space<vmem>>, vector<128x896xf32>
    %c0_1 = arith.constant 0 : index
    %c0_2 = arith.constant 0 : index
    %1 = vector.load %arg2[%c0_1, %c0_2] : memref<896x128xf32, #tpu.memory_space<vmem>>, vector<896x128xf32>
    %c0_3 = arith.constant 0 : index
    %c0_4 = arith.constant 0 : index
    %2 = vector.load %arg3[%c0_3, %c0_4] : memref<1x128xf32, #tpu.memory_space<vmem>>, vector<1x128xf32>
    %cst = arith.constant dense<0.000000e+00> : vector<128x128xf32>
    %3 = tpu.matmul %0, %1, %cst {dimension_numbers = #tpu.dot_dimension_numbers<[1], [0], [0], [1], [0, 0, 1, 1], [], []>} : vector<128x896xf32>, vector<896x128xf32>, vector<128x128xf32> -> vector<128x128xf32>
    %4 = vector.broadcast %2 : vector<1x128xf32> to vector<128x128xf32>
    %5 = arith.addf %3, %4 : vector<128x128xf32>
    %cst_5 = arith.constant 0.000000e+00 : f32
    %6 = vector.broadcast %cst_5 : f32 to vector<128x128xf32>
    %7 = arith.maximumf %5, %6 : vector<128x128xf32>
    %c0_6 = arith.constant 0 : index
    %c0_7 = arith.constant 0 : index
    %8 = vector.load %arg4[%c0_6, %c0_7] : memref<128x128xf32, #tpu.memory_space<vmem>>, vector<128x128xf32>
    %c0_8 = arith.constant 0 : index
    %c0_9 = arith.constant 0 : index
    %9 = vector.load %arg5[%c0_8, %c0_9] : memref<1x128xf32, #tpu.memory_space<vmem>>, vector<1x128xf32>
    %cst_10 = arith.constant dense<0.000000e+00> : vector<128x128xf32>
    %10 = tpu.matmul %7, %8, %cst_10 {dimension_numbers = #tpu.dot_dimension_numbers<[1], [0], [0], [1], [0, 0, 1, 1], [], []>} : vector<128x128xf32>, vector<128x128xf32>, vector<128x128xf32> -> vector<128x128xf32>
    %11 = vector.broadcast %9 : vector<1x128xf32> to vector<128x128xf32>
    %12 = arith.addf %10, %11 : vector<128x128xf32>
    %cst_11 = arith.constant 0.000000e+00 : f32
    %13 = vector.broadcast %cst_11 : f32 to vector<128x128xf32>
    %14 = arith.maximumf %12, %13 : vector<128x128xf32>
    %c0_12 = arith.constant 0 : index
    %c0_13 = arith.constant 0 : index
    %15 = vector.load %arg6[%c0_12, %c0_13] : memref<128x128xf32, #tpu.memory_space<vmem>>, vector<128x128xf32>
    %c0_14 = arith.constant 0 : index
    %c0_15 = arith.constant 0 : index
    %16 = vector.load %arg7[%c0_14, %c0_15] : memref<1x128xf32, #tpu.memory_space<vmem>>, vector<1x128xf32>
    %cst_16 = arith.constant dense<0.000000e+00> : vector<128x128xf32>
    %17 = tpu.matmul %14, %15, %cst_16 {dimension_numbers = #tpu.dot_dimension_numbers<[1], [0], [0], [1], [0, 0, 1, 1], [], []>} : vector<128x128xf32>, vector<128x128xf32>, vector<128x128xf32> -> vector<128x128xf32>
    %18 = vector.broadcast %16 : vector<1x128xf32> to vector<128x128xf32>
    %19 = arith.addf %17, %18 : vector<128x128xf32>
    %c0_17 = arith.constant 0 : index
    %c0_18 = arith.constant 0 : index
    %20 = vector.load %arg8[%c0_17, %c0_18] : memref<128x128xf32, #tpu.memory_space<vmem>>, vector<128x128xf32>
    tpu.vector_store %arg8[%c0_17, %c0_18], %19 {strides = array<i32>} : memref<128x128xf32, #tpu.memory_space<vmem>>, vector<128x128xf32>,
    return
  }
  func.func @transform_0(%arg0: i32) -> (i32, i32) {
    %c0_i32 = arith.constant 0 : i32
    %c0_i32_0 = arith.constant 0 : i32
    return %arg0, %c0_i32 : i32, i32
  }
  func.func @transform_1(%arg0: i32) -> (i32, i32) {
    %c0_i32 = arith.constant 0 : i32
    %c0_i32_0 = arith.constant 0 : i32
    %c0_i32_1 = arith.constant 0 : i32
    return %c0_i32, %c0_i32_0 : i32, i32
  }
  func.func @transform_2(%arg0: i32) -> (i32, i32) {
    %c0_i32 = arith.constant 0 : i32
    %c0_i32_0 = arith.constant 0 : i32
    %c0_i32_1 = arith.constant 0 : i32
    return %c0_i32, %c0_i32_0 : i32, i32
  }
  func.func @transform_3(%arg0: i32) -> (i32, i32) {
    %c0_i32 = arith.constant 0 : i32
    %c0_i32_0 = arith.constant 0 : i32
    %c0_i32_1 = arith.constant 0 : i32
    return %c0_i32, %c0_i32_0 : i32, i32
  }
  func.func @transform_4(%arg0: i32) -> (i32, i32) {
    %c0_i32 = arith.constant 0 : i32
    %c0_i32_0 = arith.constant 0 : i32
    %c0_i32_1 = arith.constant 0 : i32
    return %c0_i32, %c0_i32_0 : i32, i32
  }
  func.func @transform_5(%arg0: i32) -> (i32, i32) {
    %c0_i32 = arith.constant 0 : i32
    %c0_i32_0 = arith.constant 0 : i32
    %c0_i32_1 = arith.constant 0 : i32
    return %c0_i32, %c0_i32_0 : i32, i32
  }
  func.func @transform_6(%arg0: i32) -> (i32, i32) {
    %c0_i32 = arith.constant 0 : i32
    %c0_i32_0 = arith.constant 0 : i32
    %c0_i32_1 = arith.constant 0 : i32
    return %c0_i32, %c0_i32_0 : i32, i32
  }
  func.func @transform_7(%arg0: i32) -> (i32, i32) {
    %c0_i32 = arith.constant 0 : i32
    %c0_i32_0 = arith.constant 0 : i32
    return %arg0, %c0_i32 : i32, i32
  }
}

</mosaic_0001>

<bundles_post_ra>
// kernel: tpu_custom_call.1
= control target key start
LH: loop header
LB: loop body
LE: loop exit
PB: predicated region body
PF: predicated region fallthrough
CT: control target
= control target key end

     0   :  { %s3156_s0 = inlined_call_operand.hbm [shape: f32[256,896], index: 0, kind: input, shape index: {}]   ;;  %s3157_s1 = inlined_call_operand.hbm [shape: f32[896,128], index: 1, kind: input, shape index: {}]   ;;  %s3158_s2 = inlined_call_operand.vmem [shape: f32[1,128], index: 2, kind: input, shape index: {}]   ;;  %s3159_s3 = inlined_call_operand.hbm [shape: f32[128,128], index: 3, kind: input, shape index: {}]   ;;  %s3160_s4 = inlined_call_operand.vmem [shape: f32[1,128], index: 4, kind: input, shape index: {}]   ;;  %s3161_s5 = inlined_call_operand.hbm [shape: f32[128,128], index: 5, kind: input, shape index: {}]   ;;  %s3162_s6 = inlined_call_operand.vmem [shape: f32[1,128], index: 6, kind: input, shape index: {}]   ;;  %s3163_s7 = inlined_call_operand.hbm [shape: f32[256,128], index: 7, kind: output, shape index: {}]  }
   0x1   :  { %3172 = sst [smem:[#allocation39_spill]] %s3157_s1 }
   0x2   :  { %12 = vsyncpa [#allocation3], 0 }
   0x3   :  { %14 = vsyncpa [#allocation3 + $0x1], 0 }
   0x4   :  { %15 = vsyncpa [#allocation6], 0 }
   0x5   :  { %16 = vsyncpa [#allocation9], 0 }
   0x6   :  { %17 = vsyncpa [#allocation4], 0 }
   0x7   :  { %19 = vsyncpa [#allocation4 + $0x1], 0  ;;  %s2531_s24 = smov 0   ;;  %s2533_s25 = smov 0  }
   0x8   :  { %s2535_s26 = smov 0   ;;  %s2537_s27 = smov 0  }
   0x9 LB: > { %s2552_s28 = sadd.s32 4294967295, %s2478_s27   ;;  %s1655_s29 = sadd.s32 4294967294, %s2478_s27   ;;  %s2478_s27 = sphi %s2537_s27, %s3241_s27   ;;  %s2474_s26 = sphi %s2535_s26, %s3240_s26   ;;  %s2470_s25 = sphi %s2533_s25, %s3239_s25   ;;  %s2466_s24 = sphi %s2531_s24, %s3238_s24  }
   0xa   : > { %p45_p0 = scmp.ne.s32.totalorder %s2470_s25, %s2466_s24  ;;  %p3164_p1 = scmp.eq.s32.totalorder %s2552_s28, 0 }
   0xb   : > { %p201_p3 = scmp.eq.s32.totalorder %s1655_s29, 1  ;;  %p1656_p5 = scmp.ge.s32.totalorder %s2478_s27, 1 }
   0xc   : > { %p2561_p4 = por %p3164_p1, %p45_p0  ;;  %p208_p7 = scmp.lt.s32.totalorder %s2478_s27, 3 }
   0xd   : > { %p2566_p6 = por %p201_p3, %p45_p0  ;;  %s2480_s10 = smov [#allocation5]  }
   0xe   : > { %s3173_s30 = scalar_select %p2561_p4, 1, 0 }
   0xf   : > { %s3174_s8 = scalar_select %p2566_p6, 1, 0 }
  0x10   : > { %p2571_p8 = pnand %p1656_p5, %p208_p7  ;;  %s220_s11 = sshll.u32 %s2480_s10, 4  ;;  %s221_s11 = int_to_ptr.vmem [resolvable:$true] %s220_s11 }
  0x11   : > { %s2481_s13 = smov [#allocation7]   ;;  %s2482_s15 = smov [#allocation8]  }
  0x12   : > { %s3175_s9 = scalar_select %p2571_p8, 1, 0 }
  0x13   : > { %p2233_p9 = pneg %p2571_p8  ;;  %s236_s14 = sshll.u32 %s2481_s13, 4  ;;  %s237_s14 = int_to_ptr.vmem [resolvable:$true] %s236_s14 }
  0x14   : > { %s252_s16 = sshll.u32 %s2482_s15, 4  ;;  %s2311_s17 = scalar_lea.vmem %s221_s11, 14336  ;;  %s253_s16 = int_to_ptr.vmem [resolvable:$true] %s252_s16 }
  0x15   : > { %p2580_p11 = pnand %p2233_p9, %p3164_p1  ;;  %p2312_p13 = scmp.ne.s32.totalorder %s221_s11, %s2311_s17 }
  0x16   : > { %p2319_p5 = scmp.lt.s32.totalorder %s221_s11, %s221_s11  ;;  %p2320_p7 = scmp.lt.s32.totalorder %s2311_s17, %s2311_s17 }
  0x17   : > { %p2302_p12 = pneg %p2580_p11 }
  0x18   : > { %p2321_p9 = por %p2320_p7, %p2319_p5 }
  0x19   : > { %p2314_p0 = pnand %p2312_p13, %p2302_p12 }
  0x1b   : > { %p2315_p3 = pneg %p2314_p0 }
  0x1d   : > { %p2322_p10 = pnand %p2321_p9, %p2315_p3 }
  0x1f   : > { %2325 = shalt.err (!%p2322_p10)
}
  0x20   : > { %s2483_s18 = smov 128   ;;  %s2484_s19 = smov 8  }
  0x21   : > { %s3177_s1 = sld [smem:[#allocation39_spill]]  ;;  %s2337_s22 = scalar_lea.vmem %s237_s14, 2048 }
  0x22   : > { %p2338_p1 = scmp.ne.s32.totalorder %s237_s14, %s2337_s22  ;;  %p2345_p2 = scmp.lt.s32.totalorder %s237_s14, %s237_s14 }
  0x23   : > { %p2346_p6 = scmp.lt.s32.totalorder %s2337_s22, %s2337_s22 }
  0x24   : > { %p2340_p13 = pnand %p2338_p1, %p2302_p12 }
  0x25   : > { %p2347_p5 = por %p2346_p6, %p2345_p2 }
  0x26   : > { %p2341_p0 = pneg %p2340_p13 }
  0x27   : > { %2236 = dma.hbm_to_vmem [thread:$0]  (!%p2580_p11), %s3177_s1, 14336, %s221_s11, [#allocation6], %s2483_s18, %s2483_s18, %s2484_s19  }
  0x28   : > { %p2348_p3 = pnand %p2347_p5, %p2341_p0 }
  0x2a   : > { %2351 = shalt.err (!%p2348_p3)
}
  0x2b   : > { %2239 = dma.hbm_to_vmem [thread:$0]  (!%p2580_p11), %s3159_s3, 2048, %s237_s14, [#allocation6], %s2483_s18, %s2483_s18, %s2484_s19  }
  0x2c   : > { %s2363_s10 = scalar_lea.vmem %s253_s16, 2048  ;;  %p2371_p9 = scmp.lt.s32.totalorder %s253_s16, %s253_s16 }
  0x2d   : > { %p2364_p10 = scmp.ne.s32.totalorder %s253_s16, %s2363_s10  ;;  %p2372_p13 = scmp.lt.s32.totalorder %s2363_s10, %s2363_s10 }
  0x2f   : > { %p2366_p7 = pnand %p2364_p10, %p2302_p12  ;;  %p2373_p4 = por %p2372_p13, %p2371_p9 }
  0x31   : > { %p2367_p1 = pneg %p2366_p7 }
  0x33   : > { %p2374_p2 = pnand %p2373_p4, %p2367_p1 }
  0x35   : > { %2377 = shalt.err (!%p2374_p2)
}
  0x36   : > { %2242 = dma.hbm_to_vmem [thread:$0]  (!%p2580_p11), %s3161_s5, 2048, %s253_s16, [#allocation9], %s2483_s18, %s2483_s18, %s2484_s19  }
  0x37   : > { %s2611_s14 = sadd.s32 1, %s2478_s27   ;;  %s32_s12 = sadd.s32 1, %s2474_s26 }
  0x38   : > { %s29_s15 = ssub.s32 %s2478_s27, %s2611_s14  ;;  %p39_p6 = scmp.ne.s32.totalorder %s2474_s26, %s2470_s25 }
  0x39   : > { %p30_p4 = scmp.eq.s32.totalorder %s29_s15, 0  ;;  %p40_p12 = scmp.eq.s32.totalorder %s2478_s27, 0 }
  0x3a   : > { %p2254_p0 = scmp.lt.s32.totalorder %s2478_s27, 2  ;;  %p3178_p3 = scmp.eq.s32.totalorder %s2552_s28, 1 }
  0x3b   : > { %s2621_s17 = scalar_select %p30_p4, %s2474_s26, %s32_s12  }
  0x3c   : > { %p41_p5 = por %p40_p12, %p39_p6  ;;  %p2625_p10 = por %p3178_p3, %p39_p6 }
  0x3d   : > { %s269_s21 = sand.u32 1, %s2474_s26   ;;  %s2215_s22 = smul.u32 14336, %s2478_s27 }
  0x3e   : > { %s3179_s20 = scalar_select %p2625_p10, 1, 0 }
  0x3f   : > { %s2214_s16 = smul.u32 896, %s269_s21  ;;  %s2634_s23 = scalar_lea.hbm %s3156_s0, %s2215_s22 }
  0x40   : > { %p2636_p11 = pnand %p2254_p0, %p41_p5  ;;  %s2642_s13 = scalar_lea.sflag [#allocation3], %s269_s21 }
  0x41   : > { %s273_s10 = scalar_lea.vmem [#allocation2], %s2214_s16  ;;  %s2378_s15 = scalar_lea.hbm %s2634_s23, 14336 }
  0x42   : > { %s281_s11 = sshll.u32 %s273_s10, 4  ;;  %p2379_p7 = scmp.ne.s32.totalorder %s2634_s23, %s2378_s15  ;;  %s2640_s11 = int_to_ptr.vmem [resolvable:$true] %s281_s11 }
  0x43   : > { %p2380_p1 = pneg %p2636_p11  ;;  %s2383_s18 = scalar_lea.hbm %s3156_s0, 28672 }
  0x44   : > { %p2384_p2 = scmp.lt.s32.totalorder %s2634_s23, %s3156_s0  ;;  %p2385_p4 = scmp.lt.s32.totalorder %s2383_s18, %s2378_s15 }
  0x45   : > { %p2381_p9 = pnand %p2380_p1, %p2379_p7 }
  0x46   : > { %p2386_p6 = por %p2385_p4, %p2384_p2 }
  0x47   : > { %p2382_p13 = pneg %p2381_p9 }
  0x49   : > { %p2387_p12 = pnand %p2386_p6, %p2382_p13 }
  0x4b   : > { %2390 = shalt.err (!%p2387_p12)
}
  0x4c   : > { %s2391_s21 = scalar_lea.vmem %s2640_s11, 14336  ;;  %s2485_s16 = smov [#allocation2]  }
  0x4d   : > { %p2392_p0 = scmp.ne.s32.totalorder %s2640_s11, %s2391_s21  ;;  %s2396_s10 = sshll.u32 %s2485_s16, 4  ;;  %s2397_s10 = int_to_ptr.vmem [resolvable:$false] %s2396_s10 }
  0x4e   : > { %s2398_s12 = scalar_lea.vmem %s2397_s10, 28672  ;;  %p2399_p7 = scmp.lt.s32.totalorder %s2640_s11, %s2397_s10 }
  0x4f   : > { %p2394_p5 = pnand %p2392_p0, %p2380_p1  ;;  %p2400_p9 = scmp.lt.s32.totalorder %s2398_s12, %s2391_s21 }
  0x51   : > { %p2395_p3 = pneg %p2394_p5  ;;  %p2401_p10 = por %p2400_p9, %p2399_p7 }
  0x53   : > { %p2402_p8 = pnand %p2401_p10, %p2395_p3 }
  0x55   : > { %2405 = shalt.err (!%p2402_p8)
}
  0x56   : > { %s2486_s1 = smov 896   ;;  %s2487_s15 = smov 56  }
  0x57   : > { %2246 = dma.hbm_to_vmem [thread:$0]  (!%p2636_p11), %s2634_s23, 14336, %s2640_s11, %s2642_s13, %s2486_s1, %s2486_s1, %s2487_s15  }
  0x58   : > { %p3181_p1 = scmp.ne.s32.totalorder %s3175_s9, 0 }
  0x5a   : > { %293 = sbr.rel (%p3181_p1) target bundleno = 878 (0x36e), region = 48 }
  0x5f   : > { %s2666_s22 = sand.u32 1, %s2470_s25   ;;  %p3182_p8 = scmp.ne.s32.totalorder %s3173_s30, 0 }
  0x60   : > { %s2216_s18 = smul.u32 896, %s2666_s22  ;;  %s296_s19 = scalar_lea.sflag [#allocation3], %s2666_s22 }
  0x62   : > { %s2670_s21 = scalar_lea.vmem [#allocation2], %s2216_s18 }
  0x63   : > { %2449 = dma.done.wait (%p3182_p8), %s296_s19, 14336  }
  0x64   : > { %2451 = vsyncadd (%p3182_p8), %s296_s19, 4294952960  ;;  %p3183_p10 = scmp.eq.s32.totalorder %s2552_s28, 0 }
  0x66   : > { %2453 = dma.done.wait (%p3183_p10), [#allocation6], 16384   ;;  %p3184_p11 = pmov %p3183_p10 }
  0x67   : > { %p3185_p13 = pmov %p3183_p10 }
  0x68   : > { %2455 = vsyncadd (%p3184_p11), [#allocation6], 4294950912 }
  0x69   : > { %2457 = dma.done.wait (%p3185_p13), [#allocation9], 2048   ;;  %p3186_p2 = pmov %p3183_p10 }
  0x6a   : > { %v487_v0 = vld [vmem:[#allocation5 + $0xf8] sm:$0xff]  ;;  %v486_v2 = vld [vmem:[#allocation5 + $0xf0] sm:$0xff]  ;;  %v485_v6 = vld [vmem:[#allocation5 + $0xe8] sm:$0xff]  ;;  %s1668_s11 = sshll.u32 %s2666_s22, 7  ;;  %s1677_s12 = sshll.u32 %s2552_s28, 11 }
  0x6b   : > { %2459 = vsyncadd (%p3186_p2), [#allocation9], 4294965248  ;;  %v471_v1 = vld [vmem:[#allocation5 + $0x78] sm:$0xff]  ;;  %1678 = vmatprep.subr.mxu0 %v487_v0  ;;  %v470_v4 = vld [vmem:[#allocation5 + $0x70] sm:$0xff]  ;;  %s3088_s10 = scalar_lea.vmem [#allocation10], %s1668_s11  ;;  %s3109_s19 = scalar_lea.hbm %s3163_s7, %s1677_s12 }
  0x6c   : > { %v519_v3 = vld [vmem:[#allocation5 + $0x1f8] sm:$0xff]  ;;  %1679 = vmatpush3.msra.mxu0 %v471_v1  ;;  %v518_v7 = vld [vmem:[#allocation5 + $0x1f0] sm:$0xff]  ;;  %v469_v8 = vld [vmem:[#allocation5 + $0x68] sm:$0xff]  ;;  %s1553_s1 = sshll.u32 %s3088_s10, 4  ;;  %p3235_p6 = scmp.ne.s32.totalorder %s3179_s20, 0  ;;  %s3111_s1 = int_to_ptr.vmem [resolvable:$true] %s1553_s1 }
  0x6d   : > { %v503_v5 = vld [vmem:[#allocation5 + $0x178] sm:$0xff]  ;;  %1758 = vmatprep.subr.mxu1 %v519_v3  ;;  %1680 = vmatprep.subr.mxu0 %v486_v2  ;;  %v502_v9 = vld [vmem:[#allocation5 + $0x170] sm:$0xff]  ;;  %v517_v10 = vld [vmem:[#allocation5 + $0x1e8] sm:$0xff]  ;;  %s2406_s30 = scalar_lea.vmem %s3111_s1, 2048  ;;  %s2488_s28 = smov [#allocation10]  }
  0x6e   : > { %1759 = vmatpush3.msra.mxu1 %v503_v5  ;;  %1681 = vmatpush3.msra.mxu0 %v470_v4  ;;  %v484_v11 = vld [vmem:[#allocation5 + $0xe0] sm:$0xff]  ;;  %v501_v12 = vld [vmem:[#allocation5 + $0x168] sm:$0xff]  ;;  %v483_v15 = vld [vmem:[#allocation5 + $0xd8] sm:$0xff]  ;;  %p2407_p4 = scmp.ne.s32.totalorder %s3111_s1, %s2406_s30  ;;  %s2410_s9 = sshll.u32 %s2488_s28, 4  ;;  %s2411_s9 = int_to_ptr.vmem [resolvable:$false] %s2410_s9 }
  0x6f   : > { %1760 = vmatprep.subr.mxu1 %v518_v7  ;;  %1682 = vmatprep.subr.mxu0 %v485_v6  ;;  %v468_v13 = vld [vmem:[#allocation5 + $0x60] sm:$0xff]  ;;  %v467_v17 = vld [vmem:[#allocation5 + $0x58] sm:$0xff]  ;;  %v482_v19 = vld [vmem:[#allocation5 + $0xd0] sm:$0xff]  ;;  %s2412_s23 = scalar_lea.vmem %s2411_s9, 4096  ;;  %p2413_p5 = scmp.lt.s32.totalorder %s3111_s1, %s2411_s9 }
  0x70   : > { %1761 = vmatpush3.msra.mxu1 %v502_v9  ;;  %v516_v14 = vld [vmem:[#allocation5 + $0x1e0] sm:$0xff]  ;;  %1683 = vmatpush3.msra.mxu0 %v469_v8  ;;  %v515_v18 = vld [vmem:[#allocation5 + $0x1d8] sm:$0xff]  ;;  %v466_v21 = vld [vmem:[#allocation5 + $0x50] sm:$0xff]  ;;  %p2408_p12 = pnand %p2407_p4, %p3235_p6  ;;  %p2414_p3 = scmp.lt.s32.totalorder %s2412_s23, %s2406_s30 }
  0x71   : > { %1762 = vmatprep.subr.mxu1 %v517_v10  ;;  %v500_v16 = vld [vmem:[#allocation5 + $0x160] sm:$0xff]  ;;  %1684 = vmatprep.subr.mxu0 %v484_v11  ;;  %v499_v20 = vld [vmem:[#allocation5 + $0x158] sm:$0xff]  ;;  %v514_v22 = vld [vmem:[#allocation5 + $0x1d0] sm:$0xff] }
  0x72   : > { %1763 = vmatpush3.msra.mxu1 %v501_v12  ;;  %1685 = vmatpush3.msra.mxu0 %v468_v13  ;;  %v481_v23 = vld [vmem:[#allocation5 + $0xc8] sm:$0xff]  ;;  %v498_v24 = vld [vmem:[#allocation5 + $0x150] sm:$0xff]  ;;  %v480_v27 = vld [vmem:[#allocation5 + $0xc0] sm:$0xff]  ;;  %p2409_p0 = pneg %p2408_p12  ;;  %p2415_p7 = por %p2414_p3, %p2413_p5 }
  0x73   : > { %1764 = vmatprep.subr.mxu1 %v516_v14  ;;  %1686 = vmatprep.subr.mxu0 %v483_v15  ;;  %v465_v25 = vld [vmem:[#allocation5 + $0x48] sm:$0xff]  ;;  %v464_v29 = vld [vmem:[#allocation5 + $0x40] sm:$0xff]  ;;  %v479_v31 = vld [vmem:[#allocation5 + $0xb8] sm:$0xff] }
  0x74   : > { %1765 = vmatpush3.msra.mxu1 %v500_v16  ;;  %1687 = vmatpush3.msra.mxu0 %v467_v17  ;;  %v513_v26 = vld [vmem:[#allocation5 + $0x1c8] sm:$0xff]  ;;  %v512_v30 = vld [vmem:[#allocation5 + $0x1c0] sm:$0xff]  ;;  %v463_v33 = vld [vmem:[#allocation5 + $0x38] sm:$0xff]  ;;  %p2416_p9 = pnand %p2415_p7, %p2409_p0 }
  0x75   : > { %1766 = vmatprep.subr.mxu1 %v515_v18  ;;  %1688 = vmatprep.subr.mxu0 %v482_v19  ;;  %v497_v28 = vld [vmem:[#allocation5 + $0x148] sm:$0xff]  ;;  %v496_v32 = vld [vmem:[#allocation5 + $0x140] sm:$0xff]  ;;  %v511_v34 = vld [vmem:[#allocation5 + $0x1b8] sm:$0xff] }
  0x76   : > { %1767 = vmatpush3.msra.mxu1 %v499_v20  ;;  %1689 = vmatpush3.msra.mxu0 %v466_v21  ;;  %v478_v35 = vld [vmem:[#allocation5 + $0xb0] sm:$0xff]  ;;  %v495_v36 = vld [vmem:[#allocation5 + $0x138] sm:$0xff]  ;;  %v477_v39 = vld [vmem:[#allocation5 + $0xa8] sm:$0xff] }
  0x77   : > { %1768 = vmatprep.subr.mxu1 %v514_v22  ;;  %1690 = vmatprep.subr.mxu0 %v481_v23  ;;  %v462_v37 = vld [vmem:[#allocation5 + $0x30] sm:$0xff]  ;;  %v461_v41 = vld [vmem:[#allocation5 + $0x28] sm:$0xff]  ;;  %v476_v43 = vld [vmem:[#allocation5 + $0xa0] sm:$0xff] }
  0x78   : > { %1769 = vmatpush3.msra.mxu1 %v498_v24  ;;  %1691 = vmatpush3.msra.mxu0 %v465_v25  ;;  %v510_v38 = vld [vmem:[#allocation5 + $0x1b0] sm:$0xff]  ;;  %v509_v42 = vld [vmem:[#allocation5 + $0x1a8] sm:$0xff]  ;;  %v460_v45 = vld [vmem:[#allocation5 + $0x20] sm:$0xff] }
  0x79   : > { %1770 = vmatprep.subr.mxu1 %v513_v26  ;;  %1692 = vmatprep.subr.mxu0 %v480_v27  ;;  %v494_v40 = vld [vmem:[#allocation5 + $0x130] sm:$0xff]  ;;  %v493_v44 = vld [vmem:[#allocation5 + $0x128] sm:$0xff]  ;;  %v508_v46 = vld [vmem:[#allocation5 + $0x1a0] sm:$0xff] }
  0x7a   : > { %1771 = vmatpush3.msra.mxu1 %v497_v28  ;;  %1693 = vmatpush3.msra.mxu0 %v464_v29  ;;  %v475_v47 = vld [vmem:[#allocation5 + $0x98] sm:$0xff]  ;;  %v492_v48 = vld [vmem:[#allocation5 + $0x120] sm:$0xff]  ;;  %v474_v51 = vld [vmem:[#allocation5 + $0x90] sm:$0xff] }
  0x7b   : > { %1772 = vmatprep.subr.mxu1 %v512_v30  ;;  %1694 = vmatprep.subr.mxu0 %v479_v31  ;;  %v459_v49 = vld [vmem:[#allocation5 + $0x18] sm:$0xff]  ;;  %v458_v53 = vld [vmem:[#allocation5 + $0x10] sm:$0xff]  ;;  %v473_v55 = vld [vmem:[#allocation5 + $0x88] sm:$0xff] }
  0x7c   : > { %1773 = vmatpush3.msra.mxu1 %v496_v32  ;;  %1695 = vmatpush3.msra.mxu0 %v463_v33  ;;  %v507_v50 = vld [vmem:[#allocation5 + $0x198] sm:$0xff]  ;;  %v506_v54 = vld [vmem:[#allocation5 + $0x190] sm:$0xff]  ;;  %v457_v57 = vld [vmem:[#allocation5 + $0x8] sm:$0xff] }
  0x7d   : > { %1774 = vmatprep.subr.mxu1 %v511_v34  ;;  %1696 = vmatprep.subr.mxu0 %v478_v35  ;;  %v491_v52 = vld [vmem:[#allocation5 + $0x118] sm:$0xff]  ;;  %v490_v56 = vld [vmem:[#allocation5 + $0x110] sm:$0xff]  ;;  %v505_v58 = vld [vmem:[#allocation5 + $0x188] sm:$0xff] }
  0x7e   : > { %1775 = vmatpush3.msra.mxu1 %v495_v36  ;;  %1697 = vmatpush3.msra.mxu0 %v462_v37  ;;  %v472_v59 = vld [vmem:[#allocation5 + $0x80] sm:$0xff]  ;;  %v345_v60 = vld [vmem:[%s2670_s21 + $0x8] sm:$0xff]  ;;  %v551_v1 = vld [vmem:[#allocation5 + $0x2f8] sm:$0xff] }
  0x7f   : > { %1776 = vmatprep.subr.mxu1 %v510_v38  ;;  %1698 = vmatprep.subr.mxu0 %v477_v39  ;;  %v456_v61 = vld [vmem:[#allocation5] sm:$0xff]  ;;  %v489_v62 = vld [vmem:[#allocation5 + $0x108] sm:$0xff]  ;;  %v347_v3 = vld [vmem:[%s2670_s21 + $0x18] sm:$0xff] }
  0x80   : > { %1777 = vmatpush3.msra.mxu1 %v494_v40  ;;  %1699 = vmatpush3.msra.mxu0 %v461_v41  ;;  %v344_v63 = vld [vmem:[%s2670_s21] sm:$0xff]  ;;  %v535_v4 = vld [vmem:[#allocation5 + $0x278] sm:$0xff]  ;;  %v346_v5 = vld [vmem:[%s2670_s21 + $0x10] sm:$0xff] }
  0x81   : > { %1778 = vmatprep.subr.mxu1 %v509_v42  ;;  %1700 = vmatprep.subr.mxu0 %v476_v43  ;;  %v504_v0 = vld [vmem:[#allocation5 + $0x180] sm:$0xff]  ;;  %v351_v7 = vld [vmem:[%s2670_s21 + $0x38] sm:$0xff]  ;;  %v550_v8 = vld [vmem:[#allocation5 + $0x2f0] sm:$0xff] }
  0x82   : > { %1779 = vmatpush3.msra.mxu1 %v493_v44  ;;  %1701 = vmatpush3.msra.mxu0 %v460_v45  ;;  %v488_v2 = vld [vmem:[#allocation5 + $0x100] sm:$0xff]  ;;  %v354_v9 = vld [vmem:[%s2670_s21 + $0x50] sm:$0xff]  ;;  %v359_v11 = vld [vmem:[%s2670_s21 + $0x78] sm:$0xff] }
  0x83   : > { %1780 = vmatprep.subr.mxu1 %v508_v46  ;;  %1702 = vmatprep.subr.mxu0 %v475_v47  ;;  %v352_v6 = vld [vmem:[%s2670_s21 + $0x40] sm:$0xff]  ;;  %v534_v10 = vld [vmem:[#allocation5 + $0x270] sm:$0xff]  ;;  %v549_v12 = vld [vmem:[#allocation5 + $0x2e8] sm:$0xff] }
  0x84   : > { %1781 = vmatpush3.msra.mxu1 %v492_v48  ;;  %1703 = vmatpush3.msra.mxu0 %v459_v49  ;;  %v353_v13 = vld [vmem:[%s2670_s21 + $0x48] sm:$0xff]  ;;  %v358_v15 = vld [vmem:[%s2670_s21 + $0x70] sm:$0xff]  ;;  %v548_v18 = vld [vmem:[#allocation5 + $0x2e0] sm:$0xff] }
  0x85   : > { %1782 = vmatprep.subr.mxu1 %v507_v50  ;;  %1704 = vmatprep.subr.mxu0 %v474_v51  ;;  %v533_v14 = vld [vmem:[#allocation5 + $0x268] sm:$0xff]  ;;  %v366_v17 = vld [vmem:[%s2670_s21 + $0xb0] sm:$0xff]  ;;  %v532_v19 = vld [vmem:[#allocation5 + $0x260] sm:$0xff] }
  0x86   : > { %1783 = vmatpush3.msra.mxu1 %v491_v52  ;;  %1705 = vmatpush3.msra.mxu0 %v458_v53  ;;  %v361_v16 = vld [vmem:[%s2670_s21 + $0x88] sm:$0xff]  ;;  %v567_v20 = vld [vmem:[#allocation5 + $0x378] sm:$0xff]  ;;  %v360_v21 = vld [vmem:[%s2670_s21 + $0x80] sm:$0xff] }
  0x87   : > { %1784 = vmatprep.subr.mxu1 %v506_v54  ;;  %1706 = vmatprep.subr.mxu0 %v473_v55  ;;  %v547_v22 = vld [vmem:[#allocation5 + $0x2d8] sm:$0xff]  ;;  %v365_v23 = vld [vmem:[%s2670_s21 + $0xa8] sm:$0xff]  ;;  %v368_v24 = vld [vmem:[%s2670_s21 + $0xc0] sm:$0xff] }
  0x88   : > { %1785 = vmatpush3.msra.mxu1 %v490_v56  ;;  %1707 = vmatpush3.msra.mxu0 %v457_v57  ;;  %v373_v25 = vld [vmem:[%s2670_s21 + $0xe8] sm:$0xff]  ;;  %v531_v26 = vld [vmem:[#allocation5 + $0x258] sm:$0xff]  ;;  %v546_v27 = vld [vmem:[#allocation5 + $0x2d0] sm:$0xff] }
  0x89   : > { %1786 = vmatprep.subr.mxu1 %v505_v58  ;;  %1708 = vmatprep.subr.mxu0 %v472_v59  ;;  %v367_v28 = vld [vmem:[%s2670_s21 + $0xb8] sm:$0xff]  ;;  %v530_v29 = vld [vmem:[#allocation5 + $0x250] sm:$0xff]  ;;  %v372_v30 = vld [vmem:[%s2670_s21 + $0xe0] sm:$0xff] }
  0x8a   : > { %639 = vmatprep.mubr.f32.mxu0 %v345_v60  ;;  %1709 = vmatpush3.msra.mxu0 %v456_v61  ;;  %v375_v31 = vld [vmem:[%s2670_s21 + $0xf8] sm:$0xff]  ;;  %v380_v32 = vld [vmem:[%s2670_s21 + $0x120] sm:$0xff]  ;;  %v545_v33 = vld [vmem:[#allocation5 + $0x2c8] sm:$0xff] }
  0x8b   : > { %1787 = vmatpush3.msra.mxu1 %v489_v62  ;;  %640 = vmatmul.mubr.f32.vlgmr.msra.gmra.mxu0 %v344_v63  ;;  %v529_v34 = vld [vmem:[#allocation5 + $0x248] sm:$0xff]  ;;  %v566_v35 = vld [vmem:[#allocation5 + $0x370] sm:$0xff]  ;;  %v544_v37 = vld [vmem:[#allocation5 + $0x2c0] sm:$0xff] }
  0x8c   : > { %1788 = vmatprep.subr.mxu1 %v504_v0  ;;  %1838 = vmatprep.subr.mxu0 %v551_v1  ;;  %v374_v36 = vld [vmem:[%s2670_s21 + $0xf0] sm:$0xff]  ;;  %v379_v38 = vld [vmem:[%s2670_s21 + $0x118] sm:$0xff]  ;;  %v528_v41 = vld [vmem:[#allocation5 + $0x240] sm:$0xff] }
  0x8d   : > { %1789 = vmatpush3.msra.mxu1 %v488_v2  ;;  %784 = vmatprep.mubr.f32.mxu1 %v347_v3  ;;  %v382_v39 = vld [vmem:[%s2670_s21 + $0x130] sm:$0xff]  ;;  %v387_v40 = vld [vmem:[%s2670_s21 + $0x158] sm:$0xff]  ;;  %v381_v43 = vld [vmem:[%s2670_s21 + $0x128] sm:$0xff] }
  0x8e   : > { %1839 = vmatpush3.msra.mxu0 %v535_v4  ;;  %785 = vmatmul.mubr.f32.vlgmr.msra.gmra.mxu1 %v346_v5  ;;  %v543_v42 = vld [vmem:[#allocation5 + $0x2b8] sm:$0xff]  ;;  %v386_v45 = vld [vmem:[%s2670_s21 + $0x150] sm:$0xff]  ;;  %v389_v46 = vld [vmem:[%s2670_s21 + $0x168] sm:$0xff] }
  0x8f   : > { %644 = vmatprep.mubr.f32.mxu0 %v352_v6  ;;  %1840 = vmatprep.subr.mxu0 %v550_v8  ;;  %v527_v44 = vld [vmem:[#allocation5 + $0x238] sm:$0xff]  ;;  %v394_v47 = vld [vmem:[%s2670_s21 + $0x190] sm:$0xff]  ;;  %v565_v50 = vld [vmem:[#allocation5 + $0x368] sm:$0xff] }
  0x90   : > { %645 = vmatmul.mubr.f32.gmra.mxu0 %v351_v7  ;;  %789 = vmatprep.mubr.f32.mxu1 %v354_v9  ;;  %v542_v48 = vld [vmem:[#allocation5 + $0x2b0] sm:$0xff]  ;;  %v388_v51 = vld [vmem:[%s2670_s21 + $0x160] sm:$0xff]  ;;  %v541_v52 = vld [vmem:[#allocation5 + $0x2a8] sm:$0xff] }
  0x91   : > { %1841 = vmatpush3.msra.mxu0 %v534_v10  ;;  %649 = vmatprep.mubr.f32.mxu0 %v359_v11  ;;  %v526_v49 = vld [vmem:[#allocation5 + $0x230] sm:$0xff]  ;;  %v393_v53 = vld [vmem:[%s2670_s21 + $0x188] sm:$0xff]  ;;  %v396_v54 = vld [vmem:[%s2670_s21 + $0x1a0] sm:$0xff] }
  0x92   : > { %1842 = vmatprep.subr.mxu0 %v549_v12  ;;  %790 = vmatmul.mubr.f32.gmra.mxu1 %v353_v13  ;;  %v401_v55 = vld [vmem:[%s2670_s21 + $0x1c8] sm:$0xff]  ;;  %v540_v57 = vld [vmem:[#allocation5 + $0x2a0] sm:$0xff]  ;;  %v395_v58 = vld [vmem:[%s2670_s21 + $0x198] sm:$0xff] }
  0x93   : > { %1843 = vmatpush3.msra.mxu0 %v533_v14  ;;  %794 = vmatprep.mubr.f32.mxu1 %v361_v16  ;;  %v525_v56 = vld [vmem:[#allocation5 + $0x228] sm:$0xff]  ;;  %v564_v59 = vld [vmem:[#allocation5 + $0x360] sm:$0xff]  ;;  %v403_v61 = vld [vmem:[%s2670_s21 + $0x1d8] sm:$0xff] }
  0x94   : > { %650 = vmatmul.mubr.f32.gmra.mxu0 %v358_v15  ;;  %1844 = vmatprep.subr.mxu0 %v548_v18  ;;  %v400_v60 = vld [vmem:[%s2670_s21 + $0x1c0] sm:$0xff]  ;;  %v563_v63 = vld [vmem:[#allocation5 + $0x358] sm:$0xff]  ;;  %v402_v1 = vld [vmem:[%s2670_s21 + $0x1d0] sm:$0xff] }
  0x95   : > { %654 = vmatprep.mubr.f32.mxu0 %v366_v17  ;;  %1845 = vmatpush3.msra.mxu0 %v532_v19  ;;  %v408_v62 = vld [vmem:[%s2670_s21 + $0x200] sm:$0xff]  ;;  %v539_v2 = vld [vmem:[#allocation5 + $0x298] sm:$0xff]  ;;  %v410_v4 = vld [vmem:[%s2670_s21 + $0x210] sm:$0xff] }
  0x96   : > { %2014 = vmatprep.subr.mxu1 %v567_v20  ;;  %795 = vmatmul.mubr.f32.gmra.mxu1 %v360_v21  ;;  %v524_v0 = vld [vmem:[#allocation5 + $0x220] sm:$0xff]  ;;  %v407_v3 = vld [vmem:[%s2670_s21 + $0x1f8] sm:$0xff]  ;;  %v562_v6 = vld [vmem:[#allocation5 + $0x350] sm:$0xff] }
  0x97   : > { %1846 = vmatprep.subr.mxu0 %v547_v22  ;;  %799 = vmatprep.mubr.f32.mxu1 %v368_v24  ;;  %v415_v5 = vld [vmem:[%s2670_s21 + $0x238] sm:$0xff]  ;;  %v409_v8 = vld [vmem:[%s2670_s21 + $0x208] sm:$0xff]  ;;  %v538_v9 = vld [vmem:[#allocation5 + $0x290] sm:$0xff] }
  0x98   : > { %655 = vmatmul.mubr.f32.gmra.mxu0 %v365_v23  ;;  %2015 = vmatpush3.msra.mxu1 %v567_v20  ;;  %v523_v7 = vld [vmem:[#allocation5 + $0x218] sm:$0xff]  ;;  %v414_v10 = vld [vmem:[%s2670_s21 + $0x230] sm:$0xff]  ;;  %v417_v11 = vld [vmem:[%s2670_s21 + $0x248] sm:$0xff] }
  0x99   : > { %659 = vmatprep.mubr.f32.mxu0 %v373_v25  ;;  %1847 = vmatpush3.msra.mxu0 %v531_v26  ;;  %v422_v12 = vld [vmem:[%s2670_s21 + $0x270] sm:$0xff]  ;;  %v561_v13 = vld [vmem:[#allocation5 + $0x348] sm:$0xff]  ;;  %v416_v15 = vld [vmem:[%s2670_s21 + $0x240] sm:$0xff] }
  0x9a   : > { %1848 = vmatprep.subr.mxu0 %v546_v27  ;;  %800 = vmatmul.mubr.f32.gmra.mxu1 %v367_v28  ;;  %v522_v14 = vld [vmem:[#allocation5 + $0x210] sm:$0xff]  ;;  %v537_v16 = vld [vmem:[#allocation5 + $0x288] sm:$0xff]  ;;  %v424_v18 = vld [vmem:[%s2670_s21 + $0x280] sm:$0xff] }
  0x9b   : > { %1849 = vmatpush3.msra.mxu0 %v530_v29  ;;  %804 = vmatprep.mubr.f32.mxu1 %v375_v31  ;;  %v421_v17 = vld [vmem:[%s2670_s21 + $0x268] sm:$0xff]  ;;  %v560_v20 = vld [vmem:[#allocation5 + $0x340] sm:$0xff]  ;;  %v423_v22 = vld [vmem:[%s2670_s21 + $0x278] sm:$0xff] }
  0x9c   : > { %660 = vmatmul.mubr.f32.gmra.mxu0 %v372_v30  ;;  %1850 = vmatprep.subr.mxu0 %v545_v33  ;;  %v429_v19 = vld [vmem:[%s2670_s21 + $0x2a8] sm:$0xff]  ;;  %v536_v23 = vld [vmem:[#allocation5 + $0x280] sm:$0xff]  ;;  %v431_v25 = vld [vmem:[%s2670_s21 + $0x2b8] sm:$0xff] }
  0x9d   : > { %664 = vmatprep.mubr.f32.mxu0 %v380_v32  ;;  %1851 = vmatpush3.msra.mxu0 %v529_v34  ;;  %v521_v21 = vld [vmem:[#allocation5 + $0x208] sm:$0xff]  ;;  %v428_v24 = vld [vmem:[%s2670_s21 + $0x2a0] sm:$0xff]  ;;  %v559_v27 = vld [vmem:[#allocation5 + $0x338] sm:$0xff] }
  0x9e   : > { %2016 = vmatprep.subr.mxu1 %v566_v35  ;;  %805 = vmatmul.mubr.f32.gmra.mxu1 %v374_v36  ;;  %v436_v26 = vld [vmem:[%s2670_s21 + $0x2e0] sm:$0xff]  ;;  %v430_v29 = vld [vmem:[%s2670_s21 + $0x2b0] sm:$0xff]  ;;  %v435_v30 = vld [vmem:[%s2670_s21 + $0x2d8] sm:$0xff] }
  0x9f   : > { %1852 = vmatprep.subr.mxu0 %v544_v37  ;;  %809 = vmatprep.mubr.f32.mxu1 %v382_v39  ;;  %v520_v28 = vld [vmem:[#allocation5 + $0x200] sm:$0xff]  ;;  %v438_v31 = vld [vmem:[%s2670_s21 + $0x2f0] sm:$0xff]  ;;  %v443_v32 = vld [vmem:[%s2670_s21 + $0x318] sm:$0xff] }
  0xa0   : > { %665 = vmatmul.mubr.f32.gmra.mxu0 %v379_v38  ;;  %2017 = vmatpush3.msra.mxu1 %v566_v35  ;;  %v558_v33 = vld [vmem:[#allocation5 + $0x330] sm:$0xff]  ;;  %v437_v34 = vld [vmem:[%s2670_s21 + $0x2e8] sm:$0xff]  ;;  %v444_v39 = vld [vmem:[%s2670_s21 + $0x320] sm:$0xff] }
  0xa1   : > { %669 = vmatprep.mubr.f32.mxu0 %v387_v40  ;;  %1853 = vmatpush3.msra.mxu0 %v528_v41  ;;  %v442_v35 = vld [vmem:[%s2670_s21 + $0x310] sm:$0xff]  ;;  %v557_v36 = vld [vmem:[#allocation5 + $0x328] sm:$0xff]  ;;  %v556_v40 = vld [vmem:[#allocation5 + $0x320] sm:$0xff] }
  0xa2   : > { %1854 = vmatprep.subr.mxu0 %v543_v42  ;;  %810 = vmatmul.mubr.f32.gmra.mxu1 %v381_v43  ;;  %v445_v37 = vld [vmem:[%s2670_s21 + $0x328] sm:$0xff]  ;;  %v450_v38 = vld [vmem:[%s2670_s21 + $0x350] sm:$0xff]  ;;  %v555_v42 = vld [vmem:[#allocation5 + $0x318] sm:$0xff] }
  0xa3   : > { %1855 = vmatpush3.msra.mxu0 %v527_v44  ;;  %814 = vmatprep.mubr.f32.mxu1 %v389_v46  ;;  %v449_v41 = vld [vmem:[%s2670_s21 + $0x348] sm:$0xff]  ;;  %v452_v43 = vld [vmem:[%s2670_s21 + $0x360] sm:$0xff]  ;;  %v554_v46 = vld [vmem:[#allocation5 + $0x310] sm:$0xff] }
  0xa4   : > { %670 = vmatmul.mubr.f32.gmra.mxu0 %v386_v45  ;;  %1856 = vmatprep.subr.mxu0 %v542_v48  ;;  %v349_v44 = vld [vmem:[%s2670_s21 + $0x28] sm:$0xff]  ;;  %v451_v45 = vld [vmem:[%s2670_s21 + $0x358] sm:$0xff] }
  0xa5   : > { %674 = vmatprep.mubr.f32.mxu0 %v394_v47  ;;  %1857 = vmatpush3.msra.mxu0 %v526_v49  ;;  %v348_v47 = vld [vmem:[%s2670_s21 + $0x20] sm:$0xff]  ;;  %v553_v48 = vld [vmem:[#allocation5 + $0x308] sm:$0xff] }
  0xa6   : > { %2018 = vmatprep.subr.mxu1 %v565_v50  ;;  %815 = vmatmul.mubr.f32.gmra.mxu1 %v388_v51  ;;  %v356_v49 = vld [vmem:[%s2670_s21 + $0x60] sm:$0xff] }
  0xa7   : > { %1858 = vmatprep.subr.mxu0 %v541_v52  ;;  %819 = vmatprep.mubr.f32.mxu1 %v396_v54  ;;  %v552_v51 = vld [vmem:[#allocation5 + $0x300] sm:$0xff]  ;;  %v355_v52 = vld [vmem:[%s2670_s21 + $0x58] sm:$0xff] }
  0xa8   : > { %675 = vmatmul.mubr.f32.gmra.mxu0 %v393_v53  ;;  %2019 = vmatpush3.msra.mxu1 %v565_v50  ;;  %v350_v50 = vld [vmem:[%s2670_s21 + $0x30] sm:$0xff]  ;;  %v357_v53 = vld [vmem:[%s2670_s21 + $0x68] sm:$0xff]  ;;  %v363_v54 = vld [vmem:[%s2670_s21 + $0x98] sm:$0xff] }
  0xa9   : > { %679 = vmatprep.mubr.f32.mxu0 %v401_v55  ;;  %1859 = vmatpush3.msra.mxu0 %v525_v56  ;;  %v364_v55 = vld [vmem:[%s2670_s21 + $0xa0] sm:$0xff]  ;;  %v362_v56 = vld [vmem:[%s2670_s21 + $0x90] sm:$0xff] }
  0xaa   : > { %1860 = vmatprep.subr.mxu0 %v540_v57  ;;  %820 = vmatmul.mubr.f32.gmra.mxu1 %v395_v58  ;;  %v370_v57 = vld [vmem:[%s2670_s21 + $0xd0] sm:$0xff]  ;;  %v371_v58 = vld [vmem:[%s2670_s21 + $0xd8] sm:$0xff] }
  0xab   : > { %2020 = vmatprep.subr.mxu1 %v564_v59  ;;  %824 = vmatprep.mubr.f32.mxu1 %v403_v61  ;;  %v377_v61 = vld [vmem:[%s2670_s21 + $0x108] sm:$0xff] }
  0xac   : > { %680 = vmatmul.mubr.f32.gmra.mxu0 %v400_v60  ;;  %2021 = vmatpush3.msra.mxu1 %v564_v59  ;;  %v378_v59 = vld [vmem:[%s2670_s21 + $0x110] sm:$0xff]  ;;  %v369_v60 = vld [vmem:[%s2670_s21 + $0xc8] sm:$0xff] }
  0xad   : > { %684 = vmatprep.mubr.f32.mxu0 %v408_v62  ;;  %2022 = vmatprep.subr.mxu1 %v563_v63  ;;  %v385_v62 = vld [vmem:[%s2670_s21 + $0x148] sm:$0xff] }
  0xae   : > { %1861 = vmatpush3.msra.mxu0 %v524_v0  ;;  %825 = vmatmul.mubr.f32.gmra.mxu1 %v402_v1  ;;  %v376_v0 = vld [vmem:[%s2670_s21 + $0x100] sm:$0xff] }
  0xaf   : > { %1862 = vmatprep.subr.mxu0 %v539_v2  ;;  %829 = vmatprep.mubr.f32.mxu1 %v410_v4  ;;  %v384_v1 = vld [vmem:[%s2670_s21 + $0x140] sm:$0xff]  ;;  %v399_v2 = vld [vmem:[%s2670_s21 + $0x1b8] sm:$0xff] }
  0xb0   : > { %685 = vmatmul.mubr.f32.gmra.mxu0 %v407_v3  ;;  %2023 = vmatpush3.msra.mxu1 %v563_v63  ;;  %v392_v63 = vld [vmem:[%s2670_s21 + $0x180] sm:$0xff]  ;;  %v406_v3 = vld [vmem:[%s2670_s21 + $0x1f0] sm:$0xff]  ;;  %v383_v4 = vld [vmem:[%s2670_s21 + $0x138] sm:$0xff] }
  0xb1   : > { %689 = vmatprep.mubr.f32.mxu0 %v415_v5  ;;  %2024 = vmatprep.subr.mxu1 %v562_v6  ;;  %v391_v5 = vld [vmem:[%s2670_s21 + $0x178] sm:$0xff] }
  0xb2   : > { %1863 = vmatpush3.msra.mxu0 %v523_v7  ;;  %830 = vmatmul.mubr.f32.gmra.mxu1 %v409_v8  ;;  %v420_v7 = vld [vmem:[%s2670_s21 + $0x260] sm:$0xff]  ;;  %v390_v8 = vld [vmem:[%s2670_s21 + $0x170] sm:$0xff] }
  0xb3   : > { %1864 = vmatprep.subr.mxu0 %v538_v9  ;;  %834 = vmatprep.mubr.f32.mxu1 %v417_v11  ;;  %v398_v9 = vld [vmem:[%s2670_s21 + $0x1b0] sm:$0xff] }
  0xb4   : > { %690 = vmatmul.mubr.f32.gmra.mxu0 %v414_v10  ;;  %2025 = vmatpush3.msra.mxu1 %v562_v6  ;;  %v413_v6 = vld [vmem:[%s2670_s21 + $0x228] sm:$0xff]  ;;  %v427_v10 = vld [vmem:[%s2670_s21 + $0x298] sm:$0xff]  ;;  %v434_v11 = vld [vmem:[%s2670_s21 + $0x2d0] sm:$0xff] }
  0xb5   : > { %694 = vmatprep.mubr.f32.mxu0 %v422_v12  ;;  %2026 = vmatprep.subr.mxu1 %v561_v13  ;;  %v397_v12 = vld [vmem:[%s2670_s21 + $0x1a8] sm:$0xff] }
  0xb6   : > { %1865 = vmatpush3.msra.mxu0 %v522_v14  ;;  %835 = vmatmul.mubr.f32.gmra.mxu1 %v416_v15  ;;  %v441_v14 = vld [vmem:[%s2670_s21 + $0x308] sm:$0xff]  ;;  %v448_v15 = vld [vmem:[%s2670_s21 + $0x340] sm:$0xff] }
  0xb7   : > { %1866 = vmatprep.subr.mxu0 %v537_v16  ;;  %839 = vmatprep.mubr.f32.mxu1 %v424_v18  ;;  %v404_v16 = vld [vmem:[%s2670_s21 + $0x1e0] sm:$0xff]  ;;  %v455_v18 = vld [vmem:[%s2670_s21 + $0x378] sm:$0xff] }
  0xb8   : > { %695 = vmatmul.mubr.f32.gmra.mxu0 %v421_v17  ;;  %2027 = vmatpush3.msra.mxu1 %v561_v13  ;;  %v405_v13 = vld [vmem:[%s2670_s21 + $0x1e8] sm:$0xff]  ;;  %v412_v17 = vld [vmem:[%s2670_s21 + $0x220] sm:$0xff] }
  0xb9   : > { %699 = vmatprep.mubr.f32.mxu0 %v429_v19  ;;  %2028 = vmatprep.subr.mxu1 %v560_v20  ;;  %v411_v19 = vld [vmem:[%s2670_s21 + $0x218] sm:$0xff] }
  0xba   : > { %1867 = vmatpush3.msra.mxu0 %v521_v21  ;;  %840 = vmatmul.mubr.f32.gmra.mxu1 %v423_v22  ;;  %v418_v21 = vld [vmem:[%s2670_s21 + $0x250] sm:$0xff] }
  0xbb   : > { %1868 = vmatprep.subr.mxu0 %v536_v23  ;;  %844 = vmatprep.mubr.f32.mxu1 %v431_v25  ;;  %v426_v22 = vld [vmem:[%s2670_s21 + $0x290] sm:$0xff]  ;;  %v425_v23 = vld [vmem:[%s2670_s21 + $0x288] sm:$0xff]  ;;  %v432_v25 = vld [vmem:[%s2670_s21 + $0x2c0] sm:$0xff] }
  0xbc   : > { %700 = vmatmul.mubr.f32.gmra.mxu0 %v428_v24  ;;  %2029 = vmatpush3.msra.mxu1 %v560_v20  ;;  %v419_v20 = vld [vmem:[%s2670_s21 + $0x258] sm:$0xff]  ;;  %v433_v24 = vld [vmem:[%s2670_s21 + $0x2c8] sm:$0xff] }
  0xbd   : > { %704 = vmatprep.mubr.f32.mxu0 %v436_v26  ;;  %2030 = vmatprep.subr.mxu1 %v559_v27  ;;  %v440_v26 = vld [vmem:[%s2670_s21 + $0x300] sm:$0xff] }
  0xbe   : > { %1869 = vmatpush3.msra.mxu0 %v520_v28  ;;  %845 = vmatmul.mubr.f32.gmra.mxu1 %v430_v29  ;;  %v439_v28 = vld [vmem:[%s2670_s21 + $0x2f8] sm:$0xff]  ;;  %v1185_v29 = vld [vmem:[#allocation7 + $0x70] sm:$0xff] }
  0xbf   : > { %849 = vmatprep.mubr.f32.mxu1 %v438_v31  ;;  %2031 = vmatpush3.msra.mxu1 %v559_v27  ;;  %v1186_v27 = vld [vmem:[#allocation7 + $0x78] sm:$0xff]  ;;  %v1184_v31 = vld [vmem:[#allocation7 + $0x68] sm:$0xff] }
  0xc0   : > { %705 = vmatmul.mubr.f32.gmra.mxu0 %v435_v30  ;;  %2032 = vmatprep.subr.mxu1 %v558_v33  ;;  %v447_v30 = vld [vmem:[%s2670_s21 + $0x338] sm:$0xff] }
  0xc1   : > { %709 = vmatprep.mubr.f32.mxu0 %v443_v32  ;;  %2033 = vmatpush3.msra.mxu1 %v558_v33  ;;  %v446_v32 = vld [vmem:[%s2670_s21 + $0x330] sm:$0xff]  ;;  %v1183_v33 = vld [vmem:[#allocation7 + $0x60] sm:$0xff] }
  0xc2   : > { %850 = vmatmul.mubr.f32.gmra.mxu1 %v437_v34  ;;  %2034 = vmatprep.subr.mxu1 %v557_v36  ;;  %v454_v34 = vld [vmem:[%s2670_s21 + $0x370] sm:$0xff] }
  0xc3   : > { %854 = vmatprep.mubr.f32.mxu1 %v445_v37  ;;  %2035 = vmatpush3.msra.mxu1 %v557_v36  ;;  %v453_v36 = vld [vmem:[%s2670_s21 + $0x368] sm:$0xff]  ;;  %v1181_v37 = vld [vmem:[#allocation7 + $0x50] sm:$0xff]  ;;  %s1540_s21 = scalar_lea.sflag [#allocation4], %s2666_s22 }
  0xc4   : > { %710 = vmatmul.mubr.f32.gmra.mxu0 %v442_v35  ;;  %2036 = vmatprep.subr.mxu1 %v556_v40  ;;  %v1182_v35 = vld [vmem:[#allocation7 + $0x58] sm:$0xff] }
  0xc5   : > { %714 = vmatprep.mubr.f32.mxu0 %v450_v38  ;;  %2037 = vmatpush3.msra.mxu1 %v556_v40  ;;  %v1180_v38 = vld [vmem:[#allocation7 + $0x48] sm:$0xff]  ;;  %v1178_v40 = vld [vmem:[#allocation7 + $0x38] sm:$0xff] }
  0xc6   : > { %855 = vmatmul.mubr.f32.gmra.mxu1 %v444_v39  ;;  %2038 = vmatprep.subr.mxu1 %v555_v42  ;;  %v1179_v39 = vld [vmem:[#allocation7 + $0x40] sm:$0xff] }
  0xc7   : > { %859 = vmatprep.mubr.f32.mxu1 %v452_v43  ;;  %2039 = vmatpush3.msra.mxu1 %v555_v42  ;;  %v1176_v42 = vld [vmem:[#allocation7 + $0x28] sm:$0xff]  ;;  %v1175_v43 = vld [vmem:[#allocation7 + $0x20] sm:$0xff] }
  0xc8   : > { %715 = vmatmul.mubr.f32.gmra.mxu0 %v449_v41  ;;  %2040 = vmatprep.subr.mxu1 %v554_v46  ;;  %v1177_v41 = vld [vmem:[#allocation7 + $0x30] sm:$0xff] }
  0xc9   : > { %929 = vmatprep.mubr.f32.mxu0 %v349_v44  ;;  %2041 = vmatpush3.msra.mxu1 %v554_v46  ;;  %v1174_v44 = vld [vmem:[#allocation7 + $0x18] sm:$0xff]  ;;  %v1172_v46 = vld [vmem:[#allocation7 + $0x8] sm:$0xff] }
  0xca   : > { %860 = vmatmul.mubr.f32.gmra.mxu1 %v451_v45  ;;  %2042 = vmatprep.subr.mxu1 %v553_v48  ;;  %v1173_v45 = vld [vmem:[#allocation7 + $0x10] sm:$0xff] }
  0xcb   : > { %2043 = vmatpush3.msra.mxu1 %v553_v48  ;;  %2046 = vmatprep.mubr.f32.mxu1 %v350_v50 }
  0xcc   : > { %930 = vmatmul.mubr.f32.vlgmr.msra.gmra.mxu0 %v348_v47  ;;  %2044 = vmatprep.subr.mxu1 %v552_v51  ;;  %v1171_v47 = vld [vmem:[#allocation7] sm:$0xff] }
  0xcd   : > { %934 = vmatprep.mubr.f32.mxu0 %v356_v49  ;;  %2045 = vmatpush3.msra.mxu1 %v552_v51 }
  0xce   : > { %2047 = vmatmul.mubr.f32.vlgmr.msra.gmra.mxu1 %v357_v53  ;;  %2070 = vmatprep.subr.mxu1 %v1186_v27 }
  0xcf   : > { %2049 = vmatprep.mubr.f32.mxu1 %v364_v55  ;;  %2071 = vmatpush3.msra.mxu1 %v1186_v27  ;;  %v2810_v55 = vld [vmem:[#allocation8 + $0x78] sm:$0xff] }
  0xd0   : > { %935 = vmatmul.mubr.f32.gmra.mxu0 %v355_v52  ;;  %2072 = vmatprep.subr.mxu1 %v1185_v29 }
  0xd1   : > { %939 = vmatprep.mubr.f32.mxu0 %v363_v54  ;;  %2073 = vmatpush3.msra.mxu1 %v1185_v29 }
  0xd2   : > { %2050 = vmatmul.mubr.f32.gmra.mxu1 %v371_v58  ;;  %2074 = vmatprep.subr.mxu1 %v1184_v31 }
  0xd3   : > { %2052 = vmatprep.mubr.f32.mxu1 %v378_v59  ;;  %2075 = vmatpush3.msra.mxu1 %v1184_v31  ;;  %v2821_v59 = vld [vmem:[#allocation8 + $0x68] sm:$0xff] }
  0xd4   : > { %940 = vmatmul.mubr.f32.gmra.mxu0 %v362_v56  ;;  %2076 = vmatprep.subr.mxu1 %v1183_v33  ;;  %v2812_v56 = vld [vmem:[#allocation8 + $0x70] sm:$0xff] }
  0xd5   : > { %944 = vmatprep.mubr.f32.mxu0 %v370_v57  ;;  %2077 = vmatpush3.msra.mxu1 %v1183_v33 }
  0xd6   : > { %2053 = vmatmul.mubr.f32.gmra.mxu1 %v385_v62  ;;  %2078 = vmatprep.subr.mxu1 %v1182_v35  ;;  %v2829_v62 = vld [vmem:[#allocation8 + $0x60] sm:$0xff] }
  0xd7   : > { %2055 = vmatprep.mubr.f32.mxu1 %v392_v63  ;;  %2079 = vmatpush3.msra.mxu1 %v1182_v35 }
  0xd8   : > { %945 = vmatmul.mubr.f32.gmra.mxu0 %v369_v60  ;;  %2080 = vmatprep.subr.mxu1 %v1181_v37 }
  0xd9   : > { %949 = vmatprep.mubr.f32.mxu0 %v377_v61  ;;  %2081 = vmatpush3.msra.mxu1 %v1181_v37 }
  0xda   : > { %2056 = vmatmul.mubr.f32.gmra.mxu1 %v399_v2  ;;  %2082 = vmatprep.subr.mxu1 %v1180_v38 }
  0xdb   : > { %2058 = vmatprep.mubr.f32.mxu1 %v406_v3  ;;  %2083 = vmatpush3.msra.mxu1 %v1180_v38 }
  0xdc   : > { %950 = vmatmul.mubr.f32.gmra.mxu0 %v376_v0  ;;  %2084 = vmatprep.subr.mxu1 %v1179_v39 }
  0xdd   : > { %954 = vmatprep.mubr.f32.mxu0 %v384_v1  ;;  %2085 = vmatpush3.msra.mxu1 %v1179_v39  ;;  %v2837_v1 = vld [vmem:[#allocation8 + $0x58] sm:$0xff] }
  0xde   : > { %2059 = vmatmul.mubr.f32.gmra.mxu1 %v413_v6  ;;  %2086 = vmatprep.subr.mxu1 %v1178_v40 }
  0xdf   : > { %2061 = vmatprep.mubr.f32.mxu1 %v420_v7  ;;  %2087 = vmatpush3.msra.mxu1 %v1178_v40  ;;  %v2853_v7 = vld [vmem:[#allocation8 + $0x48] sm:$0xff] }
  0xe0   : > { %955 = vmatmul.mubr.f32.gmra.mxu0 %v383_v4  ;;  %2088 = vmatprep.subr.mxu1 %v1177_v41  ;;  %v2845_v4 = vld [vmem:[#allocation8 + $0x50] sm:$0xff] }
  0xe1   : > { %959 = vmatprep.mubr.f32.mxu0 %v391_v5  ;;  %2089 = vmatpush3.msra.mxu1 %v1177_v41 }
  0xe2   : > { %2062 = vmatmul.mubr.f32.gmra.mxu1 %v427_v10  ;;  %2090 = vmatprep.subr.mxu1 %v1176_v42  ;;  %v2861_v10 = vld [vmem:[#allocation8 + $0x40] sm:$0xff] }
  0xe3   : > { %2064 = vmatprep.mubr.f32.mxu1 %v434_v11  ;;  %2091 = vmatpush3.msra.mxu1 %v1176_v42 }
  0xe4   : > { %960 = vmatmul.mubr.f32.gmra.mxu0 %v390_v8  ;;  %2092 = vmatprep.subr.mxu1 %v1175_v43 }
  0xe5   : > { %964 = vmatprep.mubr.f32.mxu0 %v398_v9  ;;  %2093 = vmatpush3.msra.mxu1 %v1175_v43 }
  0xe6   : > { %2065 = vmatmul.mubr.f32.gmra.mxu1 %v441_v14  ;;  %2094 = vmatprep.subr.mxu1 %v1174_v44 }
  0xe7   : > { %2067 = vmatprep.mubr.f32.mxu1 %v448_v15  ;;  %2095 = vmatpush3.msra.mxu1 %v1174_v44 }
  0xe8   : > { %965 = vmatmul.mubr.f32.gmra.mxu0 %v397_v12  ;;  %2096 = vmatprep.subr.mxu1 %v1173_v45 }
  0xe9   : > { %969 = vmatprep.mubr.f32.mxu0 %v405_v13  ;;  %2097 = vmatpush3.msra.mxu1 %v1173_v45  ;;  %v2869_v13 = vld [vmem:[#allocation8 + $0x38] sm:$0xff] }
  0xea   : > { %2068 = vmatmul.mubr.f32.gmra.mxu1 %v455_v18  ;;  %2098 = vmatprep.subr.mxu1 %v1172_v46 }
  0xeb   : > { %2099 = vmatpush3.msra.mxu1 %v1172_v46  ;;  %2126 = vmatprep.subr.mxu0 %v2810_v55 }
  0xec   : > { %970 = vmatmul.mubr.f32.gmra.mxu0 %v404_v16  ;;  %2100 = vmatprep.subr.mxu1 %v1171_v47  ;;  %v2877_v16 = vld [vmem:[#allocation8 + $0x30] sm:$0xff] }
  0xed   : > { %974 = vmatprep.mubr.f32.mxu0 %v412_v17  ;;  %2101 = vmatpush3.msra.mxu1 %v1171_v47 }
  0xee   : > { %2182 = vmatprep.subr.mxu1 %v2810_v55  ;;  %2127 = vmatpush3.msra.mxu0 %v2810_v55 }
  0xef   : > { %2128 = vmatprep.subr.mxu0 %v2812_v56 }
  0xf0   : > { %975 = vmatmul.mubr.f32.gmra.mxu0 %v411_v19  ;;  %v2885_v19 = vld [vmem:[#allocation8 + $0x28] sm:$0xff] }
  0xf1   : > { %979 = vmatprep.mubr.f32.mxu0 %v419_v20  ;;  %2129 = vmatpush3.msra.mxu0 %v2812_v56  ;;  %3187 = vst [vmem:[#allocation15_spill] sm:$0xff] %v2885_v19 }
  0xf2   : > { %2130 = vmatprep.subr.mxu0 %v2821_v59 }
  0xf3   : > { %2131 = vmatpush3.msra.mxu0 %v2821_v59 }
  0xf4   : > { %980 = vmatmul.mubr.f32.gmra.mxu0 %v418_v21  ;;  %2132 = vmatprep.subr.mxu0 %v2829_v62 }
  0xf5   : > { %984 = vmatprep.mubr.f32.mxu0 %v426_v22  ;;  %2133 = vmatpush3.msra.mxu0 %v2829_v62  ;;  %v2893_v22 = vld [vmem:[#allocation8 + $0x20] sm:$0xff] }
  0xf6   : > { %2134 = vmatprep.subr.mxu0 %v2837_v1  ;;  %3188 = vst [vmem:[#allocation16_spill] sm:$0xff] %v2893_v22 }
  0xf7   : > { %2135 = vmatpush3.msra.mxu0 %v2837_v1 }
  0xf8   : > { %985 = vmatmul.mubr.f32.gmra.mxu0 %v425_v23  ;;  %2136 = vmatprep.subr.mxu0 %v2845_v4 }
  0xf9   : > { %989 = vmatprep.mubr.f32.mxu0 %v433_v24  ;;  %2137 = vmatpush3.msra.mxu0 %v2845_v4 }
  0xfa   : > { %2138 = vmatprep.subr.mxu0 %v2853_v7 }
  0xfb   : > { %2139 = vmatpush3.msra.mxu0 %v2853_v7 }
  0xfc   : > { %990 = vmatmul.mubr.f32.gmra.mxu0 %v432_v25  ;;  %2140 = vmatprep.subr.mxu0 %v2861_v10 }
  0xfd   : > { %994 = vmatprep.mubr.f32.mxu0 %v440_v26  ;;  %2141 = vmatpush3.msra.mxu0 %v2861_v10 }
  0xfe   : > { %2142 = vmatprep.subr.mxu0 %v2869_v13 }
  0xff   : > { %2143 = vmatpush3.msra.mxu0 %v2869_v13 }
 0x100   : > { %995 = vmatmul.mubr.f32.gmra.mxu0 %v439_v28  ;;  %2144 = vmatprep.subr.mxu0 %v2877_v16 }
 0x101   : > { %999 = vmatprep.mubr.f32.mxu0 %v447_v30  ;;  %2145 = vmatpush3.msra.mxu0 %v2877_v16 }
 0x102   : > { %2146 = vmatprep.subr.mxu0 %v2885_v19 }
 0x103   : > { %2147 = vmatpush3.msra.mxu0 %v2885_v19 }
 0x104   : > { %1000 = vmatmul.mubr.f32.gmra.mxu0 %v446_v32  ;;  %2148 = vmatprep.subr.mxu0 %v2893_v22 }
 0x105   : > { %1004 = vmatprep.mubr.f32.mxu0 %v454_v34  ;;  %2149 = vmatpush3.msra.mxu0 %v2893_v22 }
 0x108   : > { %1005 = vmatmul.mubr.f32.gmra.mxu0 %v453_v36 }
 0x14b   : > { %v2796_v48 = vpop.f32.mrf.mxu0 }
 0x14d   : > { %v2798_v49 = vpop.f32.mrf.mxu0 }
 0x14e   : > { %v2800_v50 = vpop.f32.mrf.mxu1 }
 0x150   : > { %v2802_v51 = vpop.f32.mrf.mxu0  ;;  %v2804_v52 = vpop.f32.mrf.mxu1 }
 0x152   : > { %v2806_v53 = vpop.f32.mrf.mxu0  ;;  %v2808_v54 = vpop.f32.mrf.mxu1 }
 0x154   : > { %v2814_v57 = vpop.f32.mrf.mxu0  ;;  %v2818_v58 = vpop.f32.mrf.mxu1 }
 0x156   : > { %v2823_v60 = vpop.f32.mrf.mxu0  ;;  %v2826_v61 = vpop.f32.mrf.mxu1 }
 0x158   : > { %v2831_v63 = vpop.f32.mrf.mxu0  ;;  %v2834_v0 = vpop.f32.mrf.mxu1 }
 0x15a   : > { %v2839_v2 = vpop.f32.mrf.mxu0  ;;  %v2842_v3 = vpop.f32.mrf.mxu1 }
 0x15c   : > { %v2847_v5 = vpop.f32.mrf.mxu0  ;;  %v2850_v6 = vpop.f32.mrf.mxu1 }
 0x15e   : > { %v2855_v8 = vpop.f32.mrf.mxu0  ;;  %v2858_v9 = vpop.f32.mrf.mxu1 }
 0x160   : > { %v2863_v11 = vpop.f32.mrf.mxu0  ;;  %v2866_v12 = vpop.f32.mrf.mxu1 }
 0x162   : > { %v2871_v14 = vpop.f32.mrf.mxu0  ;;  %v2874_v15 = vpop.f32.mrf.mxu1 }
 0x164   : > { %v2879_v17 = vpop.f32.mrf.mxu0  ;;  %v2882_v18 = vpop.f32.mrf.mxu1 }
 0x166   : > { %v2887_v20 = vpop.f32.mrf.mxu0  ;;  %v2890_v21 = vpop.f32.mrf.mxu1 }
 0x168   : > { %v2895_v23 = vpop.f32.mrf.mxu0  ;;  %v2898_v24 = vpop.f32.mrf.mxu1 }
 0x16a   : > { %v2901_v25 = vpop.f32.mrf.mxu0  ;;  %v2904_v26 = vpop.f32.mrf.mxu1 }
 0x16c   : > { %v2907_v27 = vpop.f32.mrf.mxu0  ;;  %v2909_v28 = vpop.f32.mrf.mxu1 }
 0x16e   : > { %v2911_v29 = vpop.f32.mrf.mxu0  ;;  %v2913_v30 = vpop.f32.mrf.mxu1 }
 0x170   : > { %v2915_v31 = vpop.f32.mrf.mxu0  ;;  %v2917_v32 = vpop.f32.mrf.mxu1 }
 0x172   : > { %v2919_v33 = vpop.f32.mrf.mxu0  ;;  %v2921_v34 = vpop.f32.mrf.mxu1 }
 0x174   : > { %v2923_v35 = vpop.f32.mrf.mxu0  ;;  %v2925_v36 = vpop.f32.mrf.mxu1 }
 0x176   : > { %v2927_v37 = vpop.f32.mrf.mxu0  ;;  %v2929_v38 = vpop.f32.mrf.mxu1 }
 0x177   : > { %3189 = vst [vmem:[#allocation17_spill] sm:$0xff] %v2929_v38 }
 0x178   : > { %v2931_v39 = vpop.f32.mrf.mxu0  ;;  %v2933_v40 = vpop.f32.mrf.mxu1 }
 0x179   : > { %3190 = vst [vmem:[#allocation18_spill] sm:$0xff] %v2931_v39  ;;  %3191 = vst [vmem:[#allocation19_spill] sm:$0xff] %v2933_v40 }
 0x17a   : > { %v2935_v41 = vpop.f32.mrf.mxu0  ;;  %v2937_v42 = vpop.f32.mrf.mxu1 }
 0x17b   : > { %3192 = vst [vmem:[#allocation20_spill] sm:$0xff] %v2935_v41  ;;  %3193 = vst [vmem:[#allocation21_spill] sm:$0xff] %v2937_v42 }
 0x17c   : > { %v2939_v43 = vpop.f32.mrf.mxu0  ;;  %v2941_v44 = vpop.f32.mrf.mxu1 }
 0x17d   : > { %3194 = vst [vmem:[#allocation22_spill] sm:$0xff] %v2939_v43  ;;  %3195 = vst [vmem:[#allocation23_spill] sm:$0xff] %v2941_v44  ;;  %v1712_v44 = vadd.f32 %v2798_v49, %v2796_v48  ;;  %v1715_v48 = vadd.f32 %v2806_v53, %v2802_v51  ;;  %v1798_v53 = vadd.f32 %v2834_v0, %v2826_v61 }
 0x17e   : > { %v2943_v45 = vpop.f32.mrf.mxu0  ;;  %v2945_v46 = vpop.f32.mrf.mxu1  ;;  %v1801_v61 = vadd.f32 %v2850_v6, %v2842_v3 }
 0x17f   : > { %3196 = vst [vmem:[#allocation24_spill] sm:$0xff] %v2943_v45  ;;  %3197 = vst [vmem:[#allocation25_spill] sm:$0xff] %v2945_v46 }
 0x180   : > { %v2947_v47 = vpop.f32.mrf.mxu0  ;;  %v2949_v22 = vpop.f32.mrf.mxu1 }
 0x181   : > { %3198 = vst [vmem:[#allocation26_spill] sm:$0xff] %v2947_v47  ;;  %3199 = vst [vmem:[#allocation27_spill] sm:$0xff] %v2949_v22  ;;  %v2968_v47 = vld [vmem:[%s3158_s2] ss:$0 sm:$0xff] }
 0x182   : > { %v2951_v38 = vpop.f32.mrf.mxu0  ;;  %v2953_v39 = vpop.f32.mrf.mxu1 }
 0x183   : > { %3200 = vst [vmem:[#allocation28_spill] sm:$0xff] %v2951_v38  ;;  %3201 = vst [vmem:[#allocation29_spill] sm:$0xff] %v2953_v39 }
 0x184   : > { %v2955_v40 = vpop.f32.mrf.mxu0  ;;  %v2957_v41 = vpop.f32.mrf.mxu1 }
 0x185   : > { %3202 = vst [vmem:[#allocation30_spill] sm:$0xff] %v2955_v40  ;;  %3203 = vst [vmem:[#allocation31_spill] sm:$0xff] %v2957_v41  ;;  %v642_v41 = vadd.f32 %v1712_v44, %v2968_v47  ;;  %v1718_v40 = vadd.f32 %v2823_v60, %v2814_v57  ;;  %v1721_v60 = vadd.f32 %v2839_v2, %v2831_v63 }
 0x186   : > { %v2959_v42 = vpop.f32.mrf.mxu0  ;;  %v2963_v45 = vpop.f32.mrf.mxu1 }
 0x187   : > { %3204 = vst [vmem:[#allocation32_spill] sm:$0xff] %v2959_v42  ;;  %3205 = vst [vmem:[#allocation33_spill] sm:$0xff] %v2963_v45  ;;  %v1792_v42 = vadd.f32 %v2804_v52, %v2800_v50  ;;  %v652_v51 = vadd.f32 %v1718_v40, %v2968_v47 }
 0x188   : > { %v2970_v22 = vpop.f32.mrf.mxu0  ;;  %v2972_v38 = vpop.f32.mrf.mxu1 }
 0x189   : > { %3206 = vst [vmem:[#allocation34_spill] sm:$0xff] %v2970_v22  ;;  %3207 = vst [vmem:[#allocation35_spill] sm:$0xff] %v2972_v38  ;;  %v787_v22 = vadd.f32 %v1792_v42, %v642_v41  ;;  %v647_v38 = vadd.f32 %v1715_v48, %v2968_v47 }
 0x18a   : > { %v2974_v39 = vpop.f32.mrf.mxu0  ;;  %v2981_v49 = vpop.f32.mrf.mxu1 }
 0x18b   : > { %3208 = vst [vmem:[#allocation36_spill] sm:$0xff] %v2974_v39  ;;  %3209 = vst [vmem:[#allocation37_spill] sm:$0xff] %v2981_v49  ;;  %v1795_v39 = vadd.f32 %v2818_v58, %v2808_v54 }
 0x18c   : > { %v1870_v45 = vpop.f32.mrf.mxu0  ;;  %v2988_v44 = vpop.f32.mrf.mxu1 }
 0x18d   : > { %3210 = vst [vmem:[#allocation38_spill] sm:$0xff] %v2988_v44  ;;  %v792_v57 = vadd.f32 %v1795_v39, %v647_v38 }
 0x18e   : > { %v1871_v46 = vpop.f32.mrf.mxu0  ;;  %v2048_v52 = vpop.f32.mrf.mxu1 }
 0x18f   : > { %v1872_v43 = vadd.f32 %v1871_v46, %v1870_v45  ;;  %v797_v45 = vadd.f32 %v1798_v53, %v652_v51  ;;  %v657_v46 = vadd.f32 %v1721_v60, %v2968_v47 }
 0x190   : > { %v1873_v50 = vpop.f32.mrf.mxu0  ;;  %v1076_v42 = vpop.f32.mrf.mxu1 }
 0x191   : > { %v932_v19 = vadd.f32 %v1872_v43, %v787_v22  ;;  %v1724_v22 = vadd.f32 %v2855_v8, %v2847_v5  ;;  %v1727_v5 = vadd.f32 %v2871_v14, %v2863_v11  ;;  %v802_v51 = vadd.f32 %v1801_v61, %v657_v46 }
 0x192   : > { %v1874_v49 = vpop.f32.mrf.mxu0  ;;  %v2051_v44 = vpop.f32.mrf.mxu1 }
 0x193   : > { %v1875_v41 = vadd.f32 %v1874_v49, %v1873_v50  ;;  %v1077_v48 = vadd.f32 %v1076_v42, %v932_v19  ;;  %v662_v49 = vadd.f32 %v1724_v22, %v2968_v47  ;;  %v1804_v50 = vadd.f32 %v2866_v12, %v2858_v9 }
 0x194   : > { %v1876_v54 = vpop.f32.mrf.mxu0  ;;  %v1086_v2 = vpop.f32.mrf.mxu1  ;;  %v667_v42 = vadd.f32 %v1727_v5, %v2968_v47  ;;  %v1730_v9 = vadd.f32 %v2887_v20, %v2879_v17  ;;  %v1807_v12 = vadd.f32 %v2882_v18, %v2874_v15  ;;  %v1733_v15 = vadd.f32 %v2901_v25, %v2895_v23 }
 0x195   : > { %v937_v58 = vadd.f32 %v1875_v41, %v792_v57  ;;  %v1155_v43 = vmax.f32 %v1077_v48, 0.0  ;;  %v807_v41 = vadd.f32 %v1804_v50, %v662_v49  ;;  %v1813_v25 = vadd.f32 %v2909_v28, %v2904_v26 }
 0x196   : > { %v1877_v40 = vpop.f32.mrf.mxu0  ;;  %v2054_v6 = vpop.f32.mrf.mxu1  ;;  %v672_v17 = vadd.f32 %v1730_v9, %v2968_v47  ;;  %v812_v20 = vadd.f32 %v1807_v12, %v667_v42  ;;  %v677_v23 = vadd.f32 %v1733_v15, %v2968_v47  ;;  %v1739_v26 = vadd.f32 %v2919_v33, %v2915_v31  ;;  %v3216_v42 = vld [vmem:[#allocation20_spill] sm:$0xff] }
 0x197   : > { %v1082_v0 = vadd.f32 %v2048_v52, %v937_v58  ;;  %v1878_v38 = vadd.f32 %v1877_v40, %v1876_v54  ;;  %2102 = vmatprep.mubr.f32.mxu1 %v1155_v43  ;;  %v1819_v33 = vadd.f32 %v2925_v36, %v2921_v34  ;;  %v3215_v36 = vld [vmem:[#allocation18_spill] sm:$0xff] }
 0x198   : > { %v1879_v63 = vpop.f32.mrf.mxu0  ;;  %v1096_v54 = vpop.f32.mrf.mxu1  ;;  %v687_v31 = vadd.f32 %v1739_v26, %v2968_v47  ;;  %v1745_v9 = vadd.f32 %v3216_v42, %v3215_v36 }
 0x199   : > { %v1156_v19 = vmax.f32 %v1082_v0, 0.0  ;;  %v942_v39 = vadd.f32 %v1878_v38, %v797_v45 }
 0x19a   : > { %v1880_v8 = vpop.f32.mrf.mxu0  ;;  %v2057_v43 = vpop.f32.mrf.mxu1  ;;  %v832_v34 = vadd.f32 %v1819_v33, %v687_v31  ;;  %v3227_v31 = vld [vmem:[#allocation29_spill] sm:$0xff] }
 0x19b   : > { %v1881_v53 = vadd.f32 %v1880_v8, %v1879_v63  ;;  %v1087_v57 = vadd.f32 %v1086_v2, %v942_v39  ;;  %2103 = vmatmul.mubr.f32.vlgmr.msra.gmra.mxu1 %v1156_v19 }
 0x19c   : > { %v1882_v3 = vpop.f32.mrf.mxu0  ;;  %2198 = vmatpush3.msra.mxu1 %v2810_v55  ;;  %v1106_v38 = vpop.f32.mrf.mxu1 }
 0x19d   : > { %v947_v52 = vadd.f32 %v1881_v53, %v802_v51  ;;  %v1157_v60 = vmax.f32 %v1087_v57, 0.0  ;;  %2183 = vmatprep.subr.mxu1 %v2812_v56 }
 0x19e   : > { %v1883_v11 = vpop.f32.mrf.mxu0  ;;  %2199 = vmatpush3.msra.mxu1 %v2812_v56  ;;  %v1810_v56 = vadd.f32 %v2898_v24, %v2890_v21  ;;  %v2060_v49 = vpop.f32.mrf.mxu1 }
 0x19f   : > { %v1884_v14 = vadd.f32 %v1883_v11, %v1882_v3  ;;  %2105 = vmatprep.mubr.f32.mxu1 %v1157_v60  ;;  %v1092_v48 = vadd.f32 %v2051_v44, %v947_v52  ;;  %2184 = vmatprep.subr.mxu1 %v2821_v59  ;;  %v3212_v52 = vld [vmem:[#allocation16_spill] sm:$0xff] }
 0x1a0   : > { %v1885_v55 = vpop.f32.mrf.mxu0  ;;  %2200 = vmatpush3.msra.mxu1 %v2821_v59  ;;  %v817_v21 = vadd.f32 %v1810_v56, %v672_v17  ;;  %v1116_v57 = vpop.f32.mrf.mxu1  ;;  %v3218_v17 = vld [vmem:[#allocation24_spill] sm:$0xff] }
 0x1a1   : > { %v952_v58 = vadd.f32 %v1884_v14, %v807_v41  ;;  %v1158_v45 = vmax.f32 %v1092_v48, 0.0  ;;  %2185 = vmatprep.subr.mxu1 %v2829_v62 }
 0x1a2   : > { %v1886_v18 = vpop.f32.mrf.mxu0  ;;  %2201 = vmatpush3.msra.mxu1 %v2829_v62  ;;  %v1736_v62 = vadd.f32 %v2911_v29, %v2907_v27  ;;  %v822_v29 = vadd.f32 %v1813_v25, %v677_v23  ;;  %v2063_v48 = vpop.f32.mrf.mxu1  ;;  %v3222_v25 = vld [vmem:[#allocation27_spill] sm:$0xff] }
 0x1a3   : > { %v1887_v44 = vadd.f32 %v1886_v18, %v1885_v55  ;;  %v1097_v22 = vadd.f32 %v1096_v54, %v952_v58  ;;  %2106 = vmatmul.mubr.f32.gmra.mxu1 %v1158_v45  ;;  %2186 = vmatprep.subr.mxu1 %v2837_v1  ;;  %v3217_v45 = vld [vmem:[#allocation22_spill] sm:$0xff]  ;;  %v697_v18 = vadd.f32 %v1745_v9, %v2968_v47 }
 0x1a4   : > { %v1888_v59 = vpop.f32.mrf.mxu0  ;;  %2202 = vmatpush3.msra.mxu1 %v2837_v1  ;;  %v682_v27 = vadd.f32 %v1736_v62, %v2968_v47  ;;  %v1748_v56 = vadd.f32 %v3218_v17, %v3217_v45  ;;  %v3234_v45 = vld [vmem:[#allocation38_spill] sm:$0xff] }
 0x1a5   : > { %v957_v40 = vadd.f32 %v1887_v44, %v812_v20  ;;  %v1159_v46 = vmax.f32 %v1097_v22, 0.0  ;;  %2187 = vmatprep.subr.mxu1 %v2845_v4  ;;  %v3219_v20 = vld [vmem:[#allocation21_spill] sm:$0xff]  ;;  %v3220_v44 = vld [vmem:[#allocation23_spill] sm:$0xff] }
 0x1a6   : > { %v1889_v24 = vpop.f32.mrf.mxu0  ;;  %2203 = vmatpush3.msra.mxu1 %v2845_v4  ;;  %v1816_v4 = vadd.f32 %v2917_v32, %v2913_v30  ;;  %v1825_v22 = vadd.f32 %v3220_v44, %v3219_v20  ;;  %v702_v62 = vadd.f32 %v1748_v56, %v2968_v47 }
 0x1a7   : > { %v1890_v61 = vadd.f32 %v1889_v24, %v1888_v59  ;;  %2108 = vmatprep.mubr.f32.mxu1 %v1159_v46  ;;  %v1102_v0 = vadd.f32 %v2054_v6, %v957_v40  ;;  %2188 = vmatprep.subr.mxu1 %v2853_v7  ;;  %v1126_v46 = vpop.f32.mrf.mxu1  ;;  %v3221_v24 = vld [vmem:[#allocation25_spill] sm:$0xff] }
 0x1a8   : > { %v1891_v1 = vpop.f32.mrf.mxu0  ;;  %2204 = vmatpush3.msra.mxu1 %v2853_v7  ;;  %v827_v30 = vadd.f32 %v1816_v4, %v682_v27 }
 0x1a9   : > { %v962_v63 = vadd.f32 %v1890_v61, %v817_v21  ;;  %v1160_v2 = vmax.f32 %v1102_v0, 0.0  ;;  %2189 = vmatprep.subr.mxu1 %v2861_v10  ;;  %v1828_v61 = vadd.f32 %v3222_v25, %v3221_v24  ;;  %v1358_v24 = vld [vmem:[#allocation8 + $0x18] sm:$0xff]  ;;  %v1357_v25 = vld [vmem:[#allocation8 + $0x10] sm:$0xff] }
 0x1aa   : > { %v1892_v28 = vpop.f32.mrf.mxu0  ;;  %2205 = vmatpush3.msra.mxu1 %v2861_v10  ;;  %v1742_v10 = vadd.f32 %v2927_v37, %v2923_v35  ;;  %v3213_v37 = vld [vmem:[#allocation17_spill] sm:$0xff]  ;;  %2150 = vmatprep.subr.mxu0 %v1358_v24 }
 0x1ab   : > { %v1893_v19 = vadd.f32 %v1892_v28, %v1891_v1  ;;  %v1107_v39 = vadd.f32 %v1106_v38, %v962_v63  ;;  %2109 = vmatmul.mubr.f32.gmra.mxu1 %v1160_v2  ;;  %2190 = vmatprep.subr.mxu1 %v2869_v13  ;;  %v842_v1 = vadd.f32 %v1825_v22, %v697_v18  ;;  %v3223_v38 = vld [vmem:[#allocation26_spill] sm:$0xff]  ;;  %v3224_v63 = vld [vmem:[#allocation28_spill] sm:$0xff]  ;;  %v2066_v28 = vpop.f32.mrf.mxu1 }
 0x1ac   : > { %v1894_v7 = vpop.f32.mrf.mxu0  ;;  %2206 = vmatpush3.msra.mxu1 %v2869_v13  ;;  %v3211_v13 = vld [vmem:[#allocation15_spill] sm:$0xff]  ;;  %v692_v35 = vadd.f32 %v1742_v10, %v2968_v47  ;;  %v1751_v2 = vadd.f32 %v3224_v63, %v3223_v38  ;;  %2151 = vmatpush3.msra.mxu0 %v1358_v24 }
 0x1ad   : > { %v967_v50 = vadd.f32 %v1893_v19, %v822_v29  ;;  %v1161_v5 = vmax.f32 %v1107_v39, 0.0  ;;  %2191 = vmatprep.subr.mxu1 %v2877_v16  ;;  %v847_v39 = vadd.f32 %v1828_v61, %v702_v62  ;;  %v3228_v10 = vld [vmem:[#allocation31_spill] sm:$0xff]  ;;  %2152 = vmatprep.subr.mxu0 %v1357_v25  ;;  %v1356_v61 = vld [vmem:[#allocation8 + $0x8] sm:$0xff] }
 0x1ae   : > { %v1895_v32 = vpop.f32.mrf.mxu0  ;;  %2207 = vmatpush3.msra.mxu1 %v2877_v16  ;;  %v3214_v16 = vld [vmem:[#allocation19_spill] sm:$0xff]  ;;  %2153 = vmatpush3.msra.mxu0 %v1357_v25 }
 0x1af   : > { %v1896_v8 = vadd.f32 %v1895_v32, %v1894_v7  ;;  %2111 = vmatprep.mubr.f32.mxu1 %v1161_v5  ;;  %v1112_v51 = vadd.f32 %v2057_v43, %v967_v50  ;;  %2192 = vmatprep.subr.mxu1 %v3211_v13  ;;  %v1822_v60 = vadd.f32 %v3214_v16, %v3213_v37  ;;  %v3225_v7 = vld [vmem:[#allocation30_spill] sm:$0xff] }
 0x1b0   : > { %v1897_v53 = vpop.f32.mrf.mxu0  ;;  %2208 = vmatpush3.msra.mxu1 %v3211_v13  ;;  %v1831_v32 = vadd.f32 %v3228_v10, %v3227_v31  ;;  %v1136_v13 = vpop.f32.mrf.mxu1  ;;  %2154 = vmatprep.subr.mxu0 %v1356_v61 }
 0x1b1   : > { %v972_v3 = vadd.f32 %v1896_v8, %v827_v30  ;;  %v1162_v6 = vmax.f32 %v1112_v51, 0.0  ;;  %2193 = vmatprep.subr.mxu1 %v3212_v52  ;;  %v837_v58 = vadd.f32 %v1822_v60, %v692_v35  ;;  %v707_v30 = vadd.f32 %v1751_v2, %v2968_v47  ;;  %v3231_v60 = vld [vmem:[#allocation34_spill] sm:$0xff]  ;;  %2155 = vmatpush3.msra.mxu0 %v1356_v61 }
 0x1b2   : > { %v1898_v41 = vpop.f32.mrf.mxu0  ;;  %2209 = vmatpush3.msra.mxu1 %v3212_v52  ;;  %v3230_v52 = vld [vmem:[#allocation35_spill] sm:$0xff] }
 0x1b3   : > { %v1899_v11 = vadd.f32 %v1898_v41, %v1897_v53  ;;  %v1117_v12 = vadd.f32 %v1116_v57, %v972_v3  ;;  %2112 = vmatmul.mubr.f32.gmra.mxu1 %v1162_v6  ;;  %v3229_v6 = vld [vmem:[#allocation33_spill] sm:$0xff]  ;;  %v852_v16 = vadd.f32 %v1831_v32, %v707_v30  ;;  %v3232_v41 = vld [vmem:[#allocation36_spill] sm:$0xff]  ;;  %2194 = vmatprep.subr.mxu1 %v1358_v24 }
 0x1b4   : > { %v1900_v14 = vpop.f32.mrf.mxu0  ;;  %v1834_v35 = vadd.f32 %v3230_v52, %v3229_v6  ;;  %2210 = vmatpush3.msra.mxu1 %v1358_v24 }
 0x1b5   : > { %v977_v55 = vadd.f32 %v1899_v11, %v832_v34  ;;  %v1163_v54 = vmax.f32 %v1117_v12, 0.0  ;;  %v1757_v34 = vadd.f32 %v3232_v41, %v3231_v60  ;;  %v2069_v11 = vpop.f32.mrf.mxu1  ;;  %2195 = vmatprep.subr.mxu1 %v1357_v25 }
 0x1b6   : > { %v1901_v15 = vpop.f32.mrf.mxu0  ;;  %2211 = vmatpush3.msra.mxu1 %v1357_v25 }
 0x1b7   : > { %v1902_v59 = vadd.f32 %v1901_v15, %v1900_v14  ;;  %2114 = vmatprep.mubr.f32.mxu1 %v1163_v54  ;;  %v1122_v43 = vadd.f32 %v2060_v49, %v977_v55  ;;  %v3226_v49 = vld [vmem:[#allocation32_spill] sm:$0xff]  ;;  %v717_v54 = vadd.f32 %v1757_v34, %v2968_v47  ;;  %v1146_v20 = vpop.f32.mrf.mxu1  ;;  %2196 = vmatprep.subr.mxu1 %v1356_v61 }
 0x1b8   : > { %v1903_v40 = vpop.f32.mrf.mxu0  ;;  %v1754_v50 = vadd.f32 %v3226_v49, %v3225_v7  ;;  %2212 = vmatpush3.msra.mxu1 %v1356_v61 }
 0x1b9   : > { %v982_v21 = vadd.f32 %v1902_v59, %v837_v58  ;;  %v1164_v23 = vmax.f32 %v1122_v43, 0.0  ;;  %v3233_v58 = vld [vmem:[#allocation37_spill] sm:$0xff] }
 0x1ba   : > { %v1904_v0 = vpop.f32.mrf.mxu0  ;;  %v712_v3 = vadd.f32 %v1754_v50, %v2968_v47  ;;  %v1837_v17 = vadd.f32 %v3234_v45, %v3233_v58 }
 0x1bb   : > { %v1905_v27 = vadd.f32 %v1904_v0, %v1903_v40  ;;  %v1127_v4 = vadd.f32 %v1126_v46, %v982_v21  ;;  %2115 = vmatmul.mubr.f32.gmra.mxu1 %v1164_v23  ;;  %v1355_v0 = vld [vmem:[#allocation8] sm:$0xff] }
 0x1bc   : > { %v1906_v26 = vpop.f32.mrf.mxu0  ;;  %v862_v43 = vadd.f32 %v1837_v17, %v717_v54  ;;  %2156 = vmatprep.subr.mxu0 %v1355_v0  ;;  %2197 = vmatprep.subr.mxu1 %v1355_v0 }
 0x1bd   : > { %v987_v29 = vadd.f32 %v1905_v27, %v842_v1  ;;  %v1165_v19 = vmax.f32 %v1127_v4, 0.0  ;;  %2157 = vmatpush3.msra.mxu0 %v1355_v0  ;;  %2213 = vmatpush3.msra.mxu1 %v1355_v0  ;;  %v1670_v1 = vld [vmem:[%s3160_s4] ss:$0 sm:$0xff] }
 0x1be   : > { %v1907_v5 = vpop.f32.mrf.mxu0 }
 0x1bf   : > { %v1908_v33 = vadd.f32 %v1907_v5, %v1906_v26  ;;  %2117 = vmatprep.mubr.f32.mxu1 %v1165_v19  ;;  %v1132_v8 = vadd.f32 %v2063_v48, %v987_v29  ;;  %v857_v48 = vadd.f32 %v1834_v35, %v712_v3 }
 0x1c0   : > { %v1909_v51 = vpop.f32.mrf.mxu0 }
 0x1c1   : > { %v992_v53 = vadd.f32 %v1908_v33, %v847_v39  ;;  %v1166_v57 = vmax.f32 %v1132_v8, 0.0 }
 0x1c2   : > { %v1910_v37 = vpop.f32.mrf.mxu0 }
 0x1c3   : > { %v1911_v36 = vadd.f32 %v1910_v37, %v1909_v51  ;;  %v1137_v42 = vadd.f32 %v1136_v13, %v992_v53  ;;  %2118 = vmatmul.mubr.f32.gmra.mxu1 %v1166_v57 }
 0x1c4   : > { %v1912_v9 = vpop.f32.mrf.mxu0 }
 0x1c5   : > { %v997_v12 = vadd.f32 %v1911_v36, %v852_v16  ;;  %v1167_v14 = vmax.f32 %v1137_v42, 0.0 }
 0x1c6   : > { %v1913_v55 = vpop.f32.mrf.mxu0 }
 0x1c7   : > { %v1914_v56 = vadd.f32 %v1913_v55, %v1912_v9  ;;  %2120 = vmatprep.mubr.f32.mxu1 %v1167_v14  ;;  %v1142_v15 = vadd.f32 %v2066_v28, %v997_v12 }
 0x1c8   : > { %v1915_v18 = vpop.f32.mrf.mxu0 }
 0x1c9   : > { %v1002_v44 = vadd.f32 %v1914_v56, %v857_v48  ;;  %v1168_v22 = vmax.f32 %v1142_v15, 0.0 }
 0x1ca   : > { %v1916_v59 = vpop.f32.mrf.mxu0 }
 0x1cb   : > { %v1917_v40 = vadd.f32 %v1916_v59, %v1915_v18  ;;  %v1147_v46 = vadd.f32 %v1146_v20, %v1002_v44  ;;  %2121 = vmatmul.mubr.f32.gmra.mxu1 %v1168_v22  ;;  %v1671_v20 = vld [vmem:[%s3162_s6] ss:$0 sm:$0xff] }
 0x1cd   : > { %v1007_v21 = vadd.f32 %v1917_v40, %v862_v43  ;;  %v1169_v23 = vmax.f32 %v1147_v46, 0.0 }
 0x1cf   : > { %2123 = vmatprep.mubr.f32.mxu1 %v1169_v23  ;;  %v1152_v62 = vadd.f32 %v2069_v11, %v1007_v21 }
 0x1d1   : > { %v1170_v47 = vmax.f32 %v1152_v62, 0.0 }
 0x1d3   : > { %2124 = vmatmul.mubr.f32.gmra.mxu1 %v1170_v47 }
 0x25b   : > { %v2104_v38 = vpop.f32.mrf.mxu1 }
 0x25c   : > { %v1266_v63 = vadd.f32 %v2104_v38, %v1670_v1 }
 0x25d   : > { %v1260_v2 = vpop.f32.mrf.mxu1 }
 0x25e   : > { %v1261_v27 = vadd.f32 %v1670_v1, %v1260_v2  ;;  %v1340_v26 = vmax.f32 %v1266_v63, 0.0 }
 0x260   : > { %v1339_v4 = vmax.f32 %v1261_v27, 0.0 }
 0x262   : > { %2158 = vmatprep.mubr.f32.mxu0 %v1339_v4 }
 0x263   : > { %v2107_v28 = vpop.f32.mrf.mxu1  ;;  %2159 = vmatmul.mubr.f32.vlgmr.msra.gmra.mxu0 %v1340_v26 }
 0x264   : > { %v1276_v29 = vadd.f32 %v2107_v28, %v1670_v1 }
 0x265   : > { %v1270_v19 = vpop.f32.mrf.mxu1 }
 0x266   : > { %v1271_v39 = vadd.f32 %v1670_v1, %v1270_v19  ;;  %v1342_v49 = vmax.f32 %v1276_v29, 0.0 }
 0x268   : > { %v1341_v7 = vmax.f32 %v1271_v39, 0.0 }
 0x26a   : > { %2161 = vmatprep.mubr.f32.mxu0 %v1341_v7 }
 0x26b   : > { %v2110_v50 = vpop.f32.mrf.mxu1  ;;  %2162 = vmatmul.mubr.f32.gmra.mxu0 %v1342_v49 }
 0x26c   : > { %v1286_v5 = vadd.f32 %v2110_v50, %v1670_v1 }
 0x26d   : > { %v1280_v30 = vpop.f32.mrf.mxu1 }
 0x26e   : > { %v1281_v31 = vadd.f32 %v1670_v1, %v1280_v30  ;;  %v1344_v32 = vmax.f32 %v1286_v5, 0.0 }
 0x270   : > { %v1343_v10 = vmax.f32 %v1281_v31, 0.0 }
 0x272   : > { %2164 = vmatprep.mubr.f32.mxu0 %v1343_v10 }
 0x273   : > { %v2113_v33 = vpop.f32.mrf.mxu1  ;;  %2165 = vmatmul.mubr.f32.gmra.mxu0 %v1344_v32 }
 0x274   : > { %v1296_v8 = vadd.f32 %v2113_v33, %v1670_v1 }
 0x275   : > { %v1290_v51 = vpop.f32.mrf.mxu1 }
 0x276   : > { %v1291_v13 = vadd.f32 %v1670_v1, %v1290_v51  ;;  %v1346_v57 = vmax.f32 %v1296_v8, 0.0 }
 0x278   : > { %v1345_v53 = vmax.f32 %v1291_v13, 0.0 }
 0x27a   : > { %2167 = vmatprep.mubr.f32.mxu0 %v1345_v53 }
 0x27b   : > { %v2116_v3 = vpop.f32.mrf.mxu1  ;;  %2168 = vmatmul.mubr.f32.gmra.mxu0 %v1346_v57 }
 0x27c   : > { %v1306_v6 = vadd.f32 %v2116_v3, %v1670_v1 }
 0x27d   : > { %v1300_v52 = vpop.f32.mrf.mxu1 }
 0x27e   : > { %v1301_v35 = vadd.f32 %v1670_v1, %v1300_v52  ;;  %v1348_v16 = vmax.f32 %v1306_v6, 0.0 }
 0x280   : > { %v1347_v37 = vmax.f32 %v1301_v35, 0.0 }
 0x282   : > { %2170 = vmatprep.mubr.f32.mxu1 %v1347_v37 }
 0x283   : > { %v2119_v60 = vpop.f32.mrf.mxu1  ;;  %2171 = vmatmul.mubr.f32.vlgmr.msra.gmra.mxu1 %v1348_v16 }
 0x284   : > { %v1316_v41 = vadd.f32 %v2119_v60, %v1670_v1 }
 0x285   : > { %v1310_v34 = vpop.f32.mrf.mxu1 }
 0x286   : > { %v1311_v36 = vadd.f32 %v1670_v1, %v1310_v34  ;;  %v1350_v9 = vmax.f32 %v1316_v41, 0.0 }
 0x288   : > { %v1349_v42 = vmax.f32 %v1311_v36, 0.0 }
 0x28a   : > { %2173 = vmatprep.mubr.f32.mxu1 %v1349_v42 }
 0x28b   : > { %v2122_v11 = vpop.f32.mrf.mxu1  ;;  %2174 = vmatmul.mubr.f32.gmra.mxu1 %v1350_v9 }
 0x28c   : > { %v1326_v12 = vadd.f32 %v2122_v11, %v1670_v1 }
 0x28d   : > { %v1320_v14 = vpop.f32.mrf.mxu1 }
 0x28e   : > { %v1321_v48 = vadd.f32 %v1670_v1, %v1320_v14  ;;  %v1352_v54 = vmax.f32 %v1326_v12, 0.0 }
 0x290   : > { %v1351_v55 = vmax.f32 %v1321_v48, 0.0 }
 0x292   : > { %2176 = vmatprep.mubr.f32.mxu1 %v1351_v55 }
 0x293   : > { %v2125_v58 = vpop.f32.mrf.mxu1  ;;  %2177 = vmatmul.mubr.f32.gmra.mxu1 %v1352_v54 }
 0x294   : > { %v1336_v45 = vadd.f32 %v2125_v58, %v1670_v1 }
 0x295   : > { %v1330_v17 = vpop.f32.mrf.mxu1 }
 0x296   : > { %v1331_v56 = vadd.f32 %v1670_v1, %v1330_v17  ;;  %v1354_v18 = vmax.f32 %v1336_v45, 0.0 }
 0x298   : > { %v1353_v15 = vmax.f32 %v1331_v56, 0.0 }
 0x29a   : > { %2179 = vmatprep.mubr.f32.mxu1 %v1353_v15 }
 0x29b   : > { %2180 = vmatmul.mubr.f32.gmra.mxu1 %v1354_v18 }
 0x323   : > { %v2160_v44 = vpop.f32.mrf.mxu0 }
 0x324   : > { %v1450_v22 = vadd.f32 %v2160_v44, %v1671_v20 }
 0x325   : > { %v1444_v59 = vpop.f32.mrf.mxu0 }
 0x326   : > { %1524 = vst [vmem:[%s3088_s10 + $0x8] sm:$0xff] %v1450_v22  ;;  %v1445_v43 = vadd.f32 %v1671_v20, %v1444_v59 }
 0x328   : > { %1523 = vst [vmem:[%s3088_s10] sm:$0xff] %v1445_v43 }
 0x32b   : > { %v2163_v40 = vpop.f32.mrf.mxu0 }
 0x32c   : > { %v1460_v46 = vadd.f32 %v2163_v40, %v1671_v20 }
 0x32d   : > { %v1454_v21 = vpop.f32.mrf.mxu0 }
 0x32e   : > { %1526 = vst [vmem:[%s3088_s10 + $0x18] sm:$0xff] %v1460_v46  ;;  %v1455_v23 = vadd.f32 %v1671_v20, %v1454_v21 }
 0x330   : > { %1525 = vst [vmem:[%s3088_s10 + $0x10] sm:$0xff] %v1455_v23 }
 0x333   : > { %v2166_v62 = vpop.f32.mrf.mxu0 }
 0x334   : > { %v1470_v47 = vadd.f32 %v2166_v62, %v1671_v20 }
 0x335   : > { %v1464_v24 = vpop.f32.mrf.mxu0 }
 0x336   : > { %1528 = vst [vmem:[%s3088_s10 + $0x28] sm:$0xff] %v1470_v47  ;;  %v1465_v25 = vadd.f32 %v1671_v20, %v1464_v24 }
 0x338   : > { %1527 = vst [vmem:[%s3088_s10 + $0x20] sm:$0xff] %v1465_v25 }
 0x33b   : > { %v2169_v61 = vpop.f32.mrf.mxu0 }
 0x33c   : > { %v1480_v0 = vadd.f32 %v2169_v61, %v1671_v20 }
 0x33d   : > { %v1474_v1 = vpop.f32.mrf.mxu0 }
 0x33e   : > { %1530 = vst [vmem:[%s3088_s10 + $0x38] sm:$0xff] %v1480_v0  ;;  %v1475_v38 = vadd.f32 %v1671_v20, %v1474_v1 }
 0x340   : > { %1529 = vst [vmem:[%s3088_s10 + $0x30] sm:$0xff] %v1475_v38 }
 0x343   : > { %v2172_v63 = vpop.f32.mrf.mxu1 }
 0x344   : > { %v1490_v2 = vadd.f32 %v2172_v63, %v1671_v20 }
 0x345   : > { %v1484_v27 = vpop.f32.mrf.mxu1 }
 0x346   : > { %1532 = vst [vmem:[%s3088_s10 + $0x48] sm:$0xff] %v1490_v2  ;;  %v1485_v4 = vadd.f32 %v1671_v20, %v1484_v27 }
 0x348   : > { %1531 = vst [vmem:[%s3088_s10 + $0x40] sm:$0xff] %v1485_v4 }
 0x34b   : > { %v2175_v26 = vpop.f32.mrf.mxu1 }
 0x34c   : > { %v1500_v28 = vadd.f32 %v2175_v26, %v1671_v20 }
 0x34d   : > { %v1494_v29 = vpop.f32.mrf.mxu1 }
 0x34e   : > { %1534 = vst [vmem:[%s3088_s10 + $0x58] sm:$0xff] %v1500_v28  ;;  %v1495_v19 = vadd.f32 %v1671_v20, %v1494_v29 }
 0x350   : > { %1533 = vst [vmem:[%s3088_s10 + $0x50] sm:$0xff] %v1495_v19 }
 0x353   : > { %v2178_v39 = vpop.f32.mrf.mxu1 }
 0x354   : > { %v1510_v7 = vadd.f32 %v2178_v39, %v1671_v20 }
 0x355   : > { %v1504_v49 = vpop.f32.mrf.mxu1 }
 0x356   : > { %1536 = vst [vmem:[%s3088_s10 + $0x68] sm:$0xff] %v1510_v7  ;;  %v1505_v50 = vadd.f32 %v1671_v20, %v1504_v49 }
 0x358   : > { %1535 = vst [vmem:[%s3088_s10 + $0x60] sm:$0xff] %v1505_v50 }
 0x35b   : > { %v2181_v5 = vpop.f32.mrf.mxu1 }
 0x35c   : > { %v1520_v30 = vadd.f32 %v2181_v5, %v1671_v20 }
 0x35d   : > { %v1514_v31 = vpop.f32.mrf.mxu1 }
 0x35e   : > { %1538 = vst [vmem:[%s3088_s10 + $0x78] sm:$0xff] %v1520_v30  ;;  %v1515_v10 = vadd.f32 %v1671_v20, %v1514_v31 }
 0x360   : > { %1537 = vst [vmem:[%s3088_s10 + $0x70] sm:$0xff] %v1515_v10 }
 0x361   : > { %2419 = shalt.err (!%p2416_p9)
}
 0x362   : > { %s2420_s29 = scalar_lea.hbm %s3109_s19, 2048  ;;  %s2424_s16 = scalar_lea.hbm %s3163_s7, 4096 }
 0x363   : > { %p2421_p1 = scmp.ne.s32.totalorder %s3109_s19, %s2420_s29  ;;  %p2425_p11 = scmp.lt.s32.totalorder %s3109_s19, %s3163_s7 }
 0x364   : > { %p2426_p13 = scmp.lt.s32.totalorder %s2424_s16, %s2420_s29 }
 0x365   : > { %p2422_p8 = pnand %p2421_p1, %p3235_p6 }
 0x366   : > { %p2427_p2 = por %p2426_p13, %p2425_p11 }
 0x367   : > { %p2423_p10 = pneg %p2422_p8 }
 0x369   : > { %p2428_p4 = pnand %p2427_p2, %p2423_p10 }
 0x36b   : > { %2431 = shalt.err (!%p2428_p4)
}
 0x36c   : > { %s2489_s15 = smov 128   ;;  %s2490_s18 = smov 8  }
 0x36d   : > { %2231 = dma.vmem_to_hbm [thread:$0]  (%p3235_p6), %s3111_s1, 2048, %s3109_s19, %s1540_s21, %s2489_s15, %s2489_s15, %s2490_s18  }
 0x36e PF: > { %s1568_s30 = sand.u32 1, %s2466_s24   ;;  %p3236_p12 = scmp.ne.s32.totalorder %s3174_s8, 0 }
 0x36f   : > { %p3237_p0 = scmp.ge.s32.totalorder %s2478_s27, 2  ;;  %s1569_s28 = scalar_lea.sflag [#allocation4], %s1568_s30 }
 0x371   : > { %p2248_p5 = pnand %p3237_p0, %p3236_p12 }
 0x373   : > { %p2249_p3 = pneg %p2248_p5 }
 0x375   : > { %2461 = dma.done.wait (%p2249_p3), %s1569_s28, 2048  }
 0x376   : > { %2463 = vsyncadd (%p2249_p3), %s1569_s28, 4294965248  ;;  %p22_p7 = scmp.ge.s32.totalorder %s2611_s14, 4   ;;  %s3238_s24 = smov %s2470_s25 }
 0x377   : > { %s3239_s25 = smov %s2474_s26  ;;  %s3240_s26 = smov %s2621_s17 }
 0x378   : > { %s3241_s27 = smov %s2611_s14  ;;  %24 = sbr.rel (!%p22_p7) target bundleno = 9 (0x9), region = 105 }
 0x37d   :  { %1574 = vsyncpa [#allocation3], 1 }
 0x37e   :  { %1576 = vsyncpa [#allocation3 + $0x1], 1 }
 0x37f   :  { %1577 = vsyncpa [#allocation6], 1 }
 0x380   :  { %1578 = vsyncpa [#allocation9], 1 }
 0x381   :  { %1579 = vsyncpa [#allocation4], 1 }
 0x382   :  { %1581 = vsyncpa [#allocation4 + $0x1], 1 }

</bundles_post_ra>
